<compile_context>
chip_gen: v7x
topology: tpu7x:2x2x1
jax: 0.10.0
libtpu: 0.0.40
codegen_flags: <defaults>
</compile_context>

<pallas_src>
import math
import numpy as np
import jax
import jax.numpy as jnp
from jax import lax
from jax.experimental import pallas as pl
from jax.experimental.pallas import tpu as pltpu

T2M_KINEMATIC_CHAIN = [
    [0, 2, 5, 8, 11],
    [0, 1, 4, 7, 10],
    [0, 3, 6, 9, 12, 15],
    [9, 14, 17, 19, 21],
    [9, 13, 16, 18, 20],
]
NB_JOINTS = 22
FOUR_PI_INV = 1.0 / (4.0 * math.pi)
HALF_PI = 0.5 * math.pi


def _segments(kinematic_chain):
    paths = [chain[1:] for chain in kinematic_chain]
    starts, ends, path_id = [], [], []
    for p, path in enumerate(paths):
        for k in range(len(path) - 1):
            starts.append(path[k])
            ends.append(path[k + 1])
            path_id.append(p)
    return paths, np.array(starts), np.array(ends), np.array(path_id)


def _pick_frame_tile(F, B, max_tf=128):
    """Frame tile TF: whole F when it fits and batch already provides parallel
    grid steps; otherwise a multiple of 8 (tiling-legal) <= max_tf minimizing
    frame padding, tie-broken toward larger tiles (fewer grid steps). For
    B == 1 we force >= 2 frame tiles so both v7x TensorCores get work."""
    single_ok = not (B == 1 and F > 8)
    if F <= max_tf and single_ok:
        return F
    upper = min(F, max_tf)
    best_tf, best_key = None, None
    for tf in range(8, upper + 1, 8):
        n_tiles = -(-F // tf)
        if not single_ok and n_tiles < 2:
            continue
        key = (n_tiles * tf - F, -tf)          # (padding, prefer larger tile)
        if best_key is None or key < best_key:
            best_key, best_tf = key, tf
    return best_tf if best_tf is not None else min(F, max_tf)


def _asin(x):
    """float32 arcsin (Cephes asinf polynomial), |x| <= 1.  Built only from
    mul/add/sqrt/select so it lowers on Mosaic regardless of asin/atan2 support."""
    ax = jnp.abs(x)
    big = ax > 0.5
    z_big = (1.0 - ax) * 0.5
    z = jnp.where(big, z_big, ax * ax)
    t = jnp.where(big, jnp.sqrt(z_big), ax)
    p = ((((4.2163199048e-2 * z + 2.4181311049e-2) * z + 4.5470025998e-2) * z
          + 7.4953002686e-2) * z + 1.6666752422e-1)
    r = t * z * p + t
    r = jnp.where(big, HALF_PI - 2.0 * r, r)
    return jnp.where(x < 0.0, -r, r)


def _gli_kernel(pk_ref, w_ref, out_ref):
    # pk_ref : (1, 12, TF, SS)  pair-expanded endpoint components, channels
    #          [s1x,s1y,s1z, e1x,e1y,e1z, s2x,s2y,s2z, e2x,e2y,e2z]
    # w_ref  : (SS, PP)         kron(M, M) * 1/(4*pi)  segment-pair -> path-pair
    # out_ref: (1, TF, PP)
    def chan(c):                                   # -> (TF, SS), lane-dense
        return pk_ref[0, c, :, :]

    s1 = (chan(0), chan(1), chan(2))
    e1 = (chan(3), chan(4), chan(5))
    s2 = (chan(6), chan(7), chan(8))
    e2 = (chan(9), chan(10), chan(11))

    sub = lambda a, b: tuple(x - y for x, y in zip(a, b))
    dot = lambda a, b: a[0] * b[0] + a[1] * b[1] + a[2] * b[2]

    r13, r14 = sub(s2, s1), sub(e2, s1)
    r23, r24 = sub(s2, e1), sub(e2, e1)
    r12, r34 = sub(e1, s1), sub(e2, s2)

    # ---- Lagrange-identity face math (faces never materialized) ----
    # f0 = r13 x r14, f1 = r14 x r24, f2 = r24 x r23, f3 = r23 x r13
    d13_13, d14_14 = dot(r13, r13), dot(r14, r14)
    d24_24, d23_23 = dot(r24, r24), dot(r23, r23)
    d13_14, d13_24, d13_23 = dot(r13, r14), dot(r13, r24), dot(r13, r23)
    d14_24, d14_23 = dot(r14, r24), dot(r14, r23)
    d24_23 = dot(r24, r23)

    # |a x b|^2 = |a|^2|b|^2 - (a.b)^2
    n0 = d13_13 * d14_14 - d13_14 * d13_14
    n1 = d14_14 * d24_24 - d14_24 * d14_24
    n2 = d24_24 * d23_23 - d24_23 * d24_23
    n3 = d23_23 * d13_13 - d13_23 * d13_23

    # (a x b).(c x d) = (a.c)(b.d) - (a.d)(b.c)
    num01 = d13_14 * d14_24 - d13_24 * d14_14
    num12 = d14_24 * d24_23 - d14_23 * d24_24
    num23 = d24_23 * d13_23 - d13_24 * d23_23
    num30 = d13_23 * d13_14 - d14_23 * d13_13

    # torch degenerate rule: ||face|| == 0 -> replace its normal with ones(3).
    nz0, nz1, nz2, nz3 = n0 > 0.0, n1 > 0.0, n2 > 0.0, n3 > 0.0
    inv0 = lax.rsqrt(jnp.where(nz0, n0, 1.0))
    inv1 = lax.rsqrt(jnp.where(nz1, n1, 1.0))
    inv2 = lax.rsqrt(jnp.where(nz2, n2, 1.0))
    inv3 = lax.rsqrt(jnp.where(nz3, n3, 1.0))

    # sum of components of (a x b) = a . (b_y - b_z, b_z - b_x, b_x - b_y)
    wv = lambda v: (v[1] - v[2], v[2] - v[0], v[0] - v[1])
    sum0 = dot(r13, wv(r14))
    sum1 = dot(r14, wv(r24))
    sum2 = dot(r24, wv(r23))
    sum3 = dot(r23, wv(r13))

    def face_pair(nz_i, nz_j, num_ij, sum_i, sum_j, inv_i, inv_j):
        # both normal: f_i.f_j ; i-or-j degenerate: ones(3) dotted with the other
        raw = jnp.where(nz_i & nz_j, num_ij,
                        jnp.where(nz_i, sum_i, jnp.where(nz_j, sum_j, 3.0)))
        return _asin(jnp.clip(raw * inv_i * inv_j, -1.0, 1.0))

    total = (face_pair(nz0, nz1, num01, sum0, sum1, inv0, inv1)
             + face_pair(nz1, nz2, num12, sum1, sum2, inv1, inv2)
             + face_pair(nz2, nz3, num23, sum2, sum3, inv2, inv3)
             + face_pair(nz3, nz0, num30, sum3, sum0, inv3, inv0))

    # sign = (r34 x r12) . r13
    sign = ((r34[1] * r12[2] - r34[2] * r12[1]) * r13[0]
            + (r34[2] * r12[0] - r34[0] * r12[2]) * r13[1]
            + (r34[0] * r12[1] - r34[1] * r12[0]) * r13[2])
    gli = jnp.where(sign <= 0.0, -total, total)        # (TF, SS); 1/(4*pi) in w

    # segment-pair -> path-pair aggregation: one MXU matmul per tile.
    out_ref[0, :, :] = jnp.dot(gli, w_ref[...], preferred_element_type=jnp.float32)


def topology_batch_forward(motion1, motion2,
                           kinematic_chain=T2M_KINEMATIC_CHAIN, max_tf=128):
    B, F, J, _ = motion1.shape
    paths, starts, ends, path_id = _segments(kinematic_chain)
    S, P = len(starts), len(paths)
    SS, PP = S * S, P * P

    # segment->path indicator, pair-product (kron) aggregation; 1/(4*pi) folded in.
    m_np = np.zeros((S, P), np.float32)
    m_np[np.arange(S), path_id] = 1.0
    w = jnp.asarray(np.kron(m_np, m_np) * FOUR_PI_INV)            # (SS, PP)

    def gather(motion, idx):                                      # -> (B, 3, F, S)
        return jnp.transpose(motion[:, :, idx, :], (0, 3, 1, 2)).astype(jnp.float32)

    s1, e1 = gather(motion1, starts), gather(motion1, ends)
    s2, e2 = gather(motion2, starts), gather(motion2, ends)

    # Pair expansion built directly in final (B, 12, F, SS) layout.
    # flat pair p = i*S + j   (i = pose1 segment, j = pose2 segment)
    def expand_p1(x):                  # pose1 side: broadcast over j
        b, c, f, s = x.shape
        return jnp.broadcast_to(x[..., :, None], (b, c, f, s, s)).reshape(b, c, f, s * s)

    def expand_p2(x):                  # pose2 side: broadcast over i
        b, c, f, s = x.shape
        return jnp.broadcast_to(x[..., None, :], (b, c, f, s, s)).reshape(b, c, f, s * s)

    packed = jnp.concatenate([expand_p1(s1), expand_p1(e1),
                              expand_p2(s2), expand_p2(e2)], axis=1)   # (B,12,F,SS)

    TF = _pick_frame_tile(F, B, max_tf)
    n_ftiles = -(-F // TF)
    F_pad = n_ftiles * TF
    if F_pad != F:
        # padded frames are all-zero -> all faces degenerate -> finite values,
        # sliced off below (never NaN, never out-of-bounds).
        packed = jnp.pad(packed, ((0, 0), (0, 0), (0, F_pad - F), (0, 0)))

    in_block = 12 * TF * SS * 4
    out_block = TF * PP * 4
    w_bytes = SS * PP * 4
    # 2x double-buffered blocks + headroom for Mosaic elementwise temporaries;
    # capped well under v7x's 64 MiB physical VMEM.
    vmem_limit = int(min(48 * 2 ** 20,
                         max(16 * 2 ** 20,
                             2 * (in_block + out_block + w_bytes) + 48 * TF * SS * 4)))

    gli_flat = pl.pallas_call(
        _gli_kernel,
        out_shape=jax.ShapeDtypeStruct((B, F_pad, PP), jnp.float32),
        grid=(B, n_ftiles),
        in_specs=[pl.BlockSpec((1, 12, TF, SS), lambda b, f: (b, 0, f, 0)),
                  pl.BlockSpec((SS, PP), lambda b, f: (0, 0))],
        out_specs=pl.BlockSpec((1, TF, PP), lambda b, f: (b, f, 0)),
        compiler_params=pltpu.CompilerParams(
            dimension_semantics=("parallel", "parallel"),
            vmem_limit_bytes=vmem_limit),
    )(packed, w)

    if F_pad != F:
        gli_flat = gli_flat[:, :F]

    gli_motion = gli_flat.reshape(B, F, P, P)

    # Frame-to-frame |dGLI| max is B*F*25 floats -> plain XLA (a dedicated kernel
    # only adds launch overhead, an HBM round trip and masked 1-wide stores).
    gli_abs_vel_max = jnp.max(jnp.abs(gli_flat[:, 1:] - gli_flat[:, :-1]), axis=-1)

    return gli_motion, gli_abs_vel_max


def _reference_forward(motion1, motion2, kinematic_chain):
    """Pure numpy float64 mirror of the torch module (loops, for verification)."""
    m1 = np.asarray(motion1, dtype=np.float64)
    m2 = np.asarray(motion2, dtype=np.float64)
    paths = [chain[1:] for chain in kinematic_chain]
    B, F = m1.shape[0], m1.shape[1]
    P = len(paths)

    def gauss(s1, e1, s2, e2):
        r13, r14 = s2 - s1, e2 - s1
        r23, r24 = s2 - e1, e2 - e1
        r12, r34 = e1 - s1, e2 - s2
        faces = [np.cross(r13, r14), np.cross(r14, r24),
                 np.cross(r24, r23), np.cross(r23, r13)]
        nf = []
        for v in faces:
            n = np.linalg.norm(v)
            nf.append(v / n if n != 0 else np.ones(3))
        g = 0.0
        for i in range(4):
            g += np.arcsin(np.clip(np.dot(nf[i], nf[(i + 1) % 4]), -1.0, 1.0))
        sign = np.dot(np.cross(r34, r12), r13)
        g *= -1.0 if sign <= 0 else 1.0
        return g / (4.0 * np.pi)

    gli = np.zeros((B, F, P, P))
    for b in range(B):
        for f in range(F):
            for i, p1 in enumerate(paths):
                for j, p2 in enumerate(paths):
                    acc = 0.0
                    for a in range(len(p1) - 1):
                        for c in range(len(p2) - 1):
                            acc += gauss(m1[b, f, p1[a]], m1[b, f, p1[a + 1]],
                                         m2[b, f, p2[c]], m2[b, f, p2[c + 1]])
                    gli[b, f, i, j] = acc
    vel = np.abs(gli[:, 1:] - gli[:, :-1]).reshape(B, F - 1, -1).max(axis=-1)
    return gli, vel


if __name__ == "__main__":
    key = jax.random.PRNGKey(0)
    k1, k2 = jax.random.split(key)

    # primary small config
    B, F, J = 2, 8, NB_JOINTS
    motion1 = jax.random.normal(k1, (B, F, J, 3), jnp.float32)
    motion2 = jax.random.normal(k2, (B, F, J, 3), jnp.float32) + 0.5

    gli_motion, gli_vel_max = topology_batch_forward(motion1, motion2)
    jax.block_until_ready((gli_motion, gli_vel_max))

    ref_gli, ref_vel = _reference_forward(np.asarray(motion1), np.asarray(motion2),
                                          T2M_KINEMATIC_CHAIN)
    np.testing.assert_allclose(np.asarray(gli_motion), ref_gli, rtol=1e-3, atol=5e-3)
    np.testing.assert_allclose(np.asarray(gli_vel_max), ref_vel, rtol=1e-3, atol=5e-3)

    # second config exercising the padded / multi-frame-tile path (B=1 -> 2 tiles)
    k3, k4 = jax.random.split(k2)
    B2, F2 = 1, 10
    m1b = jax.random.normal(k3, (B2, F2, J, 3), jnp.float32)
    m2b = jax.random.normal(k4, (B2, F2, J, 3), jnp.float32) - 0.25
    g2, v2 = topology_batch_forward(m1b, m2b)
    jax.block_until_ready((g2, v2))
    r_g2, r_v2 = _reference_forward(np.asarray(m1b), np.asarray(m2b),
                                    T2M_KINEMATIC_CHAIN)
    np.testing.assert_allclose(np.asarray(g2), r_g2, rtol=1e-3, atol=5e-3)
    np.testing.assert_allclose(np.asarray(v2), r_v2, rtol=1e-3, atol=5e-3)

    print("KERNEL_OK")
</pallas_src>

<mosaic_0001>
module attributes {stable_mosaic.version = 11 : i64} {
  func.func @_gli_kernel(%arg0: i32, %arg1: i32, %arg2: memref<1x12x8x256xf32, #tpu.memory_space<vmem>>, %arg3: memref<256x25xf32, #tpu.memory_space<vmem>>, %arg4: memref<1x8x25xf32, #tpu.memory_space<vmem>>) attributes {dimension_semantics = [#tpu.dimension_semantics<parallel>, #tpu.dimension_semantics<parallel>], iteration_bounds = array<i64: 2, 1>, scalar_prefetch = 0 : i64, scratch_operands = 0 : i64, tpu.core_type = #tpu.core_type<tc>, window_params = [{transform_indices = @transform_0, window_bounds = array<i64: 1, 12, 8, 256>}, {pipeline_mode = #tpu.pipeline_mode<synchronous>, transform_indices = @transform_1, window_bounds = array<i64: 256, 25>}, {transform_indices = @transform_2, window_bounds = array<i64: 1, 8, 25>}]} {
    %c0 = arith.constant 0 : index
    %c0_0 = arith.constant 0 : index
    %c0_1 = arith.constant 0 : index
    %c0_2 = arith.constant 0 : index
    %0 = vector.load %arg2[%c0, %c0_0, %c0_1, %c0_2] : memref<1x12x8x256xf32, #tpu.memory_space<vmem>>, vector<1x1x8x256xf32>
    %1 = vector.shape_cast %0 : vector<1x1x8x256xf32> to vector<8x256xf32>
    %c0_3 = arith.constant 0 : index
    %c1 = arith.constant 1 : index
    %c0_4 = arith.constant 0 : index
    %c0_5 = arith.constant 0 : index
    %2 = vector.load %arg2[%c0_3, %c1, %c0_4, %c0_5] : memref<1x12x8x256xf32, #tpu.memory_space<vmem>>, vector<1x1x8x256xf32>
    %3 = vector.shape_cast %2 : vector<1x1x8x256xf32> to vector<8x256xf32>
    %c0_6 = arith.constant 0 : index
    %c2 = arith.constant 2 : index
    %c0_7 = arith.constant 0 : index
    %c0_8 = arith.constant 0 : index
    %4 = vector.load %arg2[%c0_6, %c2, %c0_7, %c0_8] : memref<1x12x8x256xf32, #tpu.memory_space<vmem>>, vector<1x1x8x256xf32>
    %5 = vector.shape_cast %4 : vector<1x1x8x256xf32> to vector<8x256xf32>
    %c0_9 = arith.constant 0 : index
    %c3 = arith.constant 3 : index
    %c0_10 = arith.constant 0 : index
    %c0_11 = arith.constant 0 : index
    %6 = vector.load %arg2[%c0_9, %c3, %c0_10, %c0_11] : memref<1x12x8x256xf32, #tpu.memory_space<vmem>>, vector<1x1x8x256xf32>
    %7 = vector.shape_cast %6 : vector<1x1x8x256xf32> to vector<8x256xf32>
    %c0_12 = arith.constant 0 : index
    %c4 = arith.constant 4 : index
    %c0_13 = arith.constant 0 : index
    %c0_14 = arith.constant 0 : index
    %8 = vector.load %arg2[%c0_12, %c4, %c0_13, %c0_14] : memref<1x12x8x256xf32, #tpu.memory_space<vmem>>, vector<1x1x8x256xf32>
    %9 = vector.shape_cast %8 : vector<1x1x8x256xf32> to vector<8x256xf32>
    %c0_15 = arith.constant 0 : index
    %c5 = arith.constant 5 : index
    %c0_16 = arith.constant 0 : index
    %c0_17 = arith.constant 0 : index
    %10 = vector.load %arg2[%c0_15, %c5, %c0_16, %c0_17] : memref<1x12x8x256xf32, #tpu.memory_space<vmem>>, vector<1x1x8x256xf32>
    %11 = vector.shape_cast %10 : vector<1x1x8x256xf32> to vector<8x256xf32>
    %c0_18 = arith.constant 0 : index
    %c6 = arith.constant 6 : index
    %c0_19 = arith.constant 0 : index
    %c0_20 = arith.constant 0 : index
    %12 = vector.load %arg2[%c0_18, %c6, %c0_19, %c0_20] : memref<1x12x8x256xf32, #tpu.memory_space<vmem>>, vector<1x1x8x256xf32>
    %13 = vector.shape_cast %12 : vector<1x1x8x256xf32> to vector<8x256xf32>
    %c0_21 = arith.constant 0 : index
    %c7 = arith.constant 7 : index
    %c0_22 = arith.constant 0 : index
    %c0_23 = arith.constant 0 : index
    %14 = vector.load %arg2[%c0_21, %c7, %c0_22, %c0_23] : memref<1x12x8x256xf32, #tpu.memory_space<vmem>>, vector<1x1x8x256xf32>
    %15 = vector.shape_cast %14 : vector<1x1x8x256xf32> to vector<8x256xf32>
    %c0_24 = arith.constant 0 : index
    %c8 = arith.constant 8 : index
    %c0_25 = arith.constant 0 : index
    %c0_26 = arith.constant 0 : index
    %16 = vector.load %arg2[%c0_24, %c8, %c0_25, %c0_26] : memref<1x12x8x256xf32, #tpu.memory_space<vmem>>, vector<1x1x8x256xf32>
    %17 = vector.shape_cast %16 : vector<1x1x8x256xf32> to vector<8x256xf32>
    %c0_27 = arith.constant 0 : index
    %c9 = arith.constant 9 : index
    %c0_28 = arith.constant 0 : index
    %c0_29 = arith.constant 0 : index
    %18 = vector.load %arg2[%c0_27, %c9, %c0_28, %c0_29] : memref<1x12x8x256xf32, #tpu.memory_space<vmem>>, vector<1x1x8x256xf32>
    %19 = vector.shape_cast %18 : vector<1x1x8x256xf32> to vector<8x256xf32>
    %c0_30 = arith.constant 0 : index
    %c10 = arith.constant 10 : index
    %c0_31 = arith.constant 0 : index
    %c0_32 = arith.constant 0 : index
    %20 = vector.load %arg2[%c0_30, %c10, %c0_31, %c0_32] : memref<1x12x8x256xf32, #tpu.memory_space<vmem>>, vector<1x1x8x256xf32>
    %21 = vector.shape_cast %20 : vector<1x1x8x256xf32> to vector<8x256xf32>
    %c0_33 = arith.constant 0 : index
    %c11 = arith.constant 11 : index
    %c0_34 = arith.constant 0 : index
    %c0_35 = arith.constant 0 : index
    %22 = vector.load %arg2[%c0_33, %c11, %c0_34, %c0_35] : memref<1x12x8x256xf32, #tpu.memory_space<vmem>>, vector<1x1x8x256xf32>
    %23 = vector.shape_cast %22 : vector<1x1x8x256xf32> to vector<8x256xf32>
    %24 = arith.subf %13, %1 : vector<8x256xf32>
    %25 = arith.subf %15, %3 : vector<8x256xf32>
    %26 = arith.subf %17, %5 : vector<8x256xf32>
    %27 = arith.subf %19, %1 : vector<8x256xf32>
    %28 = arith.subf %21, %3 : vector<8x256xf32>
    %29 = arith.subf %23, %5 : vector<8x256xf32>
    %30 = arith.subf %13, %7 : vector<8x256xf32>
    %31 = arith.subf %15, %9 : vector<8x256xf32>
    %32 = arith.subf %17, %11 : vector<8x256xf32>
    %33 = arith.subf %19, %7 : vector<8x256xf32>
    %34 = arith.subf %21, %9 : vector<8x256xf32>
    %35 = arith.subf %23, %11 : vector<8x256xf32>
    %36 = arith.subf %7, %1 : vector<8x256xf32>
    %37 = arith.subf %9, %3 : vector<8x256xf32>
    %38 = arith.subf %11, %5 : vector<8x256xf32>
    %39 = arith.subf %19, %13 : vector<8x256xf32>
    %40 = arith.subf %21, %15 : vector<8x256xf32>
    %41 = arith.subf %23, %17 : vector<8x256xf32>
    %42 = arith.mulf %24, %24 : vector<8x256xf32>
    %43 = arith.mulf %25, %25 : vector<8x256xf32>
    %44 = arith.addf %42, %43 : vector<8x256xf32>
    %45 = arith.mulf %26, %26 : vector<8x256xf32>
    %46 = arith.addf %44, %45 : vector<8x256xf32>
    %47 = arith.mulf %27, %27 : vector<8x256xf32>
    %48 = arith.mulf %28, %28 : vector<8x256xf32>
    %49 = arith.addf %47, %48 : vector<8x256xf32>
    %50 = arith.mulf %29, %29 : vector<8x256xf32>
    %51 = arith.addf %49, %50 : vector<8x256xf32>
    %52 = arith.mulf %33, %33 : vector<8x256xf32>
    %53 = arith.mulf %34, %34 : vector<8x256xf32>
    %54 = arith.addf %52, %53 : vector<8x256xf32>
    %55 = arith.mulf %35, %35 : vector<8x256xf32>
    %56 = arith.addf %54, %55 : vector<8x256xf32>
    %57 = arith.mulf %30, %30 : vector<8x256xf32>
    %58 = arith.mulf %31, %31 : vector<8x256xf32>
    %59 = arith.addf %57, %58 : vector<8x256xf32>
    %60 = arith.mulf %32, %32 : vector<8x256xf32>
    %61 = arith.addf %59, %60 : vector<8x256xf32>
    %62 = arith.mulf %24, %27 : vector<8x256xf32>
    %63 = arith.mulf %25, %28 : vector<8x256xf32>
    %64 = arith.addf %62, %63 : vector<8x256xf32>
    %65 = arith.mulf %26, %29 : vector<8x256xf32>
    %66 = arith.addf %64, %65 : vector<8x256xf32>
    %67 = arith.mulf %24, %33 : vector<8x256xf32>
    %68 = arith.mulf %25, %34 : vector<8x256xf32>
    %69 = arith.addf %67, %68 : vector<8x256xf32>
    %70 = arith.mulf %26, %35 : vector<8x256xf32>
    %71 = arith.addf %69, %70 : vector<8x256xf32>
    %72 = arith.mulf %24, %30 : vector<8x256xf32>
    %73 = arith.mulf %25, %31 : vector<8x256xf32>
    %74 = arith.addf %72, %73 : vector<8x256xf32>
    %75 = arith.mulf %26, %32 : vector<8x256xf32>
    %76 = arith.addf %74, %75 : vector<8x256xf32>
    %77 = arith.mulf %27, %33 : vector<8x256xf32>
    %78 = arith.mulf %28, %34 : vector<8x256xf32>
    %79 = arith.addf %77, %78 : vector<8x256xf32>
    %80 = arith.mulf %29, %35 : vector<8x256xf32>
    %81 = arith.addf %79, %80 : vector<8x256xf32>
    %82 = arith.mulf %27, %30 : vector<8x256xf32>
    %83 = arith.mulf %28, %31 : vector<8x256xf32>
    %84 = arith.addf %82, %83 : vector<8x256xf32>
    %85 = arith.mulf %29, %32 : vector<8x256xf32>
    %86 = arith.addf %84, %85 : vector<8x256xf32>
    %87 = arith.mulf %33, %30 : vector<8x256xf32>
    %88 = arith.mulf %34, %31 : vector<8x256xf32>
    %89 = arith.addf %87, %88 : vector<8x256xf32>
    %90 = arith.mulf %35, %32 : vector<8x256xf32>
    %91 = arith.addf %89, %90 : vector<8x256xf32>
    %92 = arith.mulf %46, %51 : vector<8x256xf32>
    %93 = arith.mulf %66, %66 : vector<8x256xf32>
    %94 = arith.subf %92, %93 : vector<8x256xf32>
    %95 = arith.mulf %51, %56 : vector<8x256xf32>
    %96 = arith.mulf %81, %81 : vector<8x256xf32>
    %97 = arith.subf %95, %96 : vector<8x256xf32>
    %98 = arith.mulf %56, %61 : vector<8x256xf32>
    %99 = arith.mulf %91, %91 : vector<8x256xf32>
    %100 = arith.subf %98, %99 : vector<8x256xf32>
    %101 = arith.mulf %61, %46 : vector<8x256xf32>
    %102 = arith.mulf %76, %76 : vector<8x256xf32>
    %103 = arith.subf %101, %102 : vector<8x256xf32>
    %104 = arith.mulf %66, %81 : vector<8x256xf32>
    %105 = arith.mulf %71, %51 : vector<8x256xf32>
    %106 = arith.subf %104, %105 : vector<8x256xf32>
    %107 = arith.mulf %81, %91 : vector<8x256xf32>
    %108 = arith.mulf %86, %56 : vector<8x256xf32>
    %109 = arith.subf %107, %108 : vector<8x256xf32>
    %110 = arith.mulf %91, %76 : vector<8x256xf32>
    %111 = arith.mulf %71, %61 : vector<8x256xf32>
    %112 = arith.subf %110, %111 : vector<8x256xf32>
    %113 = arith.mulf %76, %66 : vector<8x256xf32>
    %114 = arith.mulf %86, %46 : vector<8x256xf32>
    %115 = arith.subf %113, %114 : vector<8x256xf32>
    %cst = arith.constant 0.000000e+00 : f32
    %116 = vector.broadcast %cst : f32 to vector<8x256xf32>
    %117 = arith.cmpf ogt, %94, %116 : vector<8x256xf32>
    %cst_36 = arith.constant 0.000000e+00 : f32
    %118 = vector.broadcast %cst_36 : f32 to vector<8x256xf32>
    %119 = arith.cmpf ogt, %97, %118 : vector<8x256xf32>
    %cst_37 = arith.constant 0.000000e+00 : f32
    %120 = vector.broadcast %cst_37 : f32 to vector<8x256xf32>
    %121 = arith.cmpf ogt, %100, %120 : vector<8x256xf32>
    %cst_38 = arith.constant 0.000000e+00 : f32
    %122 = vector.broadcast %cst_38 : f32 to vector<8x256xf32>
    %123 = arith.cmpf ogt, %103, %122 : vector<8x256xf32>
    %cst_39 = arith.constant 1.000000e+00 : f32
    %124 = vector.broadcast %cst_39 : f32 to vector<8x256xf32>
    %125 = arith.select %117, %94, %124 : vector<8x256xi1>, vector<8x256xf32>
    %126 = math.rsqrt %125 : vector<8x256xf32>
    %cst_40 = arith.constant 1.000000e+00 : f32
    %127 = vector.broadcast %cst_40 : f32 to vector<8x256xf32>
    %128 = arith.select %119, %97, %127 : vector<8x256xi1>, vector<8x256xf32>
    %129 = math.rsqrt %128 : vector<8x256xf32>
    %cst_41 = arith.constant 1.000000e+00 : f32
    %130 = vector.broadcast %cst_41 : f32 to vector<8x256xf32>
    %131 = arith.select %121, %100, %130 : vector<8x256xi1>, vector<8x256xf32>
    %132 = math.rsqrt %131 : vector<8x256xf32>
    %cst_42 = arith.constant 1.000000e+00 : f32
    %133 = vector.broadcast %cst_42 : f32 to vector<8x256xf32>
    %134 = arith.select %123, %103, %133 : vector<8x256xi1>, vector<8x256xf32>
    %135 = math.rsqrt %134 : vector<8x256xf32>
    %136 = arith.subf %28, %29 : vector<8x256xf32>
    %137 = arith.subf %29, %27 : vector<8x256xf32>
    %138 = arith.subf %27, %28 : vector<8x256xf32>
    %139 = arith.mulf %24, %136 : vector<8x256xf32>
    %140 = arith.mulf %25, %137 : vector<8x256xf32>
    %141 = arith.addf %139, %140 : vector<8x256xf32>
    %142 = arith.mulf %26, %138 : vector<8x256xf32>
    %143 = arith.addf %141, %142 : vector<8x256xf32>
    %144 = arith.subf %34, %35 : vector<8x256xf32>
    %145 = arith.subf %35, %33 : vector<8x256xf32>
    %146 = arith.subf %33, %34 : vector<8x256xf32>
    %147 = arith.mulf %27, %144 : vector<8x256xf32>
    %148 = arith.mulf %28, %145 : vector<8x256xf32>
    %149 = arith.addf %147, %148 : vector<8x256xf32>
    %150 = arith.mulf %29, %146 : vector<8x256xf32>
    %151 = arith.addf %149, %150 : vector<8x256xf32>
    %152 = arith.subf %31, %32 : vector<8x256xf32>
    %153 = arith.subf %32, %30 : vector<8x256xf32>
    %154 = arith.subf %30, %31 : vector<8x256xf32>
    %155 = arith.mulf %33, %152 : vector<8x256xf32>
    %156 = arith.mulf %34, %153 : vector<8x256xf32>
    %157 = arith.addf %155, %156 : vector<8x256xf32>
    %158 = arith.mulf %35, %154 : vector<8x256xf32>
    %159 = arith.addf %157, %158 : vector<8x256xf32>
    %160 = arith.subf %25, %26 : vector<8x256xf32>
    %161 = arith.subf %26, %24 : vector<8x256xf32>
    %162 = arith.subf %24, %25 : vector<8x256xf32>
    %163 = arith.mulf %30, %160 : vector<8x256xf32>
    %164 = arith.mulf %31, %161 : vector<8x256xf32>
    %165 = arith.addf %163, %164 : vector<8x256xf32>
    %166 = arith.mulf %32, %162 : vector<8x256xf32>
    %167 = arith.addf %165, %166 : vector<8x256xf32>
    %168 = arith.andi %117, %119 : vector<8x256xi1>
    %cst_43 = arith.constant 3.000000e+00 : f32
    %169 = vector.broadcast %cst_43 : f32 to vector<8x256xf32>
    %170 = arith.select %119, %151, %169 : vector<8x256xi1>, vector<8x256xf32>
    %171 = arith.select %117, %143, %170 : vector<8x256xi1>, vector<8x256xf32>
    %172 = arith.select %168, %106, %171 : vector<8x256xi1>, vector<8x256xf32>
    %173 = arith.mulf %172, %126 : vector<8x256xf32>
    %174 = arith.mulf %173, %129 : vector<8x256xf32>
    %cst_44 = arith.constant -1.000000e+00 : f32
    %cst_45 = arith.constant 1.000000e+00 : f32
    %175 = vector.broadcast %cst_44 : f32 to vector<8x256xf32>
    %176 = arith.maximumf %175, %174 : vector<8x256xf32>
    %177 = vector.broadcast %cst_45 : f32 to vector<8x256xf32>
    %178 = arith.minimumf %177, %176 : vector<8x256xf32>
    %179 = math.absf %178 : vector<8x256xf32>
    %cst_46 = arith.constant 5.000000e-01 : f32
    %180 = vector.broadcast %cst_46 : f32 to vector<8x256xf32>
    %181 = arith.cmpf ogt, %179, %180 : vector<8x256xf32>
    %cst_47 = arith.constant 1.000000e+00 : f32
    %182 = vector.broadcast %cst_47 : f32 to vector<8x256xf32>
    %183 = arith.subf %182, %179 : vector<8x256xf32>
    %cst_48 = arith.constant 5.000000e-01 : f32
    %184 = vector.broadcast %cst_48 : f32 to vector<8x256xf32>
    %185 = arith.mulf %183, %184 : vector<8x256xf32>
    %186 = arith.mulf %179, %179 : vector<8x256xf32>
    %187 = arith.select %181, %185, %186 : vector<8x256xi1>, vector<8x256xf32>
    %188 = math.sqrt %185 : vector<8x256xf32>
    %189 = arith.select %181, %188, %179 : vector<8x256xi1>, vector<8x256xf32>
    %cst_49 = arith.constant 4.216320e-02 : f32
    %190 = vector.broadcast %cst_49 : f32 to vector<8x256xf32>
    %191 = arith.mulf %190, %187 : vector<8x256xf32>
    %cst_50 = arith.constant 0.024181312 : f32
    %192 = vector.broadcast %cst_50 : f32 to vector<8x256xf32>
    %193 = arith.addf %191, %192 : vector<8x256xf32>
    %194 = arith.mulf %193, %187 : vector<8x256xf32>
    %cst_51 = arith.constant 0.0454700254 : f32
    %195 = vector.broadcast %cst_51 : f32 to vector<8x256xf32>
    %196 = arith.addf %194, %195 : vector<8x256xf32>
    %197 = arith.mulf %196, %187 : vector<8x256xf32>
    %cst_52 = arith.constant 0.0749530047 : f32
    %198 = vector.broadcast %cst_52 : f32 to vector<8x256xf32>
    %199 = arith.addf %197, %198 : vector<8x256xf32>
    %200 = arith.mulf %199, %187 : vector<8x256xf32>
    %cst_53 = arith.constant 0.166667521 : f32
    %201 = vector.broadcast %cst_53 : f32 to vector<8x256xf32>
    %202 = arith.addf %200, %201 : vector<8x256xf32>
    %203 = arith.mulf %189, %187 : vector<8x256xf32>
    %204 = arith.mulf %203, %202 : vector<8x256xf32>
    %205 = arith.addf %204, %189 : vector<8x256xf32>
    %cst_54 = arith.constant 2.000000e+00 : f32
    %206 = vector.broadcast %cst_54 : f32 to vector<8x256xf32>
    %207 = arith.mulf %206, %205 : vector<8x256xf32>
    %cst_55 = arith.constant 1.57079637 : f32
    %208 = vector.broadcast %cst_55 : f32 to vector<8x256xf32>
    %209 = arith.subf %208, %207 : vector<8x256xf32>
    %210 = arith.select %181, %209, %205 : vector<8x256xi1>, vector<8x256xf32>
    %cst_56 = arith.constant 0.000000e+00 : f32
    %211 = vector.broadcast %cst_56 : f32 to vector<8x256xf32>
    %212 = arith.cmpf olt, %178, %211 : vector<8x256xf32>
    %cst_57 = arith.constant 0.000000e+00 : f32
    %213 = vector.broadcast %cst_57 : f32 to vector<8x256xf32>
    %214 = arith.subf %213, %210 : vector<8x256xf32>
    %215 = arith.select %212, %214, %210 : vector<8x256xi1>, vector<8x256xf32>
    %216 = arith.andi %119, %121 : vector<8x256xi1>
    %cst_58 = arith.constant 3.000000e+00 : f32
    %217 = vector.broadcast %cst_58 : f32 to vector<8x256xf32>
    %218 = arith.select %121, %159, %217 : vector<8x256xi1>, vector<8x256xf32>
    %219 = arith.select %119, %151, %218 : vector<8x256xi1>, vector<8x256xf32>
    %220 = arith.select %216, %109, %219 : vector<8x256xi1>, vector<8x256xf32>
    %221 = arith.mulf %220, %129 : vector<8x256xf32>
    %222 = arith.mulf %221, %132 : vector<8x256xf32>
    %cst_59 = arith.constant -1.000000e+00 : f32
    %cst_60 = arith.constant 1.000000e+00 : f32
    %223 = vector.broadcast %cst_59 : f32 to vector<8x256xf32>
    %224 = arith.maximumf %223, %222 : vector<8x256xf32>
    %225 = vector.broadcast %cst_60 : f32 to vector<8x256xf32>
    %226 = arith.minimumf %225, %224 : vector<8x256xf32>
    %227 = math.absf %226 : vector<8x256xf32>
    %cst_61 = arith.constant 5.000000e-01 : f32
    %228 = vector.broadcast %cst_61 : f32 to vector<8x256xf32>
    %229 = arith.cmpf ogt, %227, %228 : vector<8x256xf32>
    %cst_62 = arith.constant 1.000000e+00 : f32
    %230 = vector.broadcast %cst_62 : f32 to vector<8x256xf32>
    %231 = arith.subf %230, %227 : vector<8x256xf32>
    %cst_63 = arith.constant 5.000000e-01 : f32
    %232 = vector.broadcast %cst_63 : f32 to vector<8x256xf32>
    %233 = arith.mulf %231, %232 : vector<8x256xf32>
    %234 = arith.mulf %227, %227 : vector<8x256xf32>
    %235 = arith.select %229, %233, %234 : vector<8x256xi1>, vector<8x256xf32>
    %236 = math.sqrt %233 : vector<8x256xf32>
    %237 = arith.select %229, %236, %227 : vector<8x256xi1>, vector<8x256xf32>
    %cst_64 = arith.constant 4.216320e-02 : f32
    %238 = vector.broadcast %cst_64 : f32 to vector<8x256xf32>
    %239 = arith.mulf %238, %235 : vector<8x256xf32>
    %cst_65 = arith.constant 0.024181312 : f32
    %240 = vector.broadcast %cst_65 : f32 to vector<8x256xf32>
    %241 = arith.addf %239, %240 : vector<8x256xf32>
    %242 = arith.mulf %241, %235 : vector<8x256xf32>
    %cst_66 = arith.constant 0.0454700254 : f32
    %243 = vector.broadcast %cst_66 : f32 to vector<8x256xf32>
    %244 = arith.addf %242, %243 : vector<8x256xf32>
    %245 = arith.mulf %244, %235 : vector<8x256xf32>
    %cst_67 = arith.constant 0.0749530047 : f32
    %246 = vector.broadcast %cst_67 : f32 to vector<8x256xf32>
    %247 = arith.addf %245, %246 : vector<8x256xf32>
    %248 = arith.mulf %247, %235 : vector<8x256xf32>
    %cst_68 = arith.constant 0.166667521 : f32
    %249 = vector.broadcast %cst_68 : f32 to vector<8x256xf32>
    %250 = arith.addf %248, %249 : vector<8x256xf32>
    %251 = arith.mulf %237, %235 : vector<8x256xf32>
    %252 = arith.mulf %251, %250 : vector<8x256xf32>
    %253 = arith.addf %252, %237 : vector<8x256xf32>
    %cst_69 = arith.constant 2.000000e+00 : f32
    %254 = vector.broadcast %cst_69 : f32 to vector<8x256xf32>
    %255 = arith.mulf %254, %253 : vector<8x256xf32>
    %cst_70 = arith.constant 1.57079637 : f32
    %256 = vector.broadcast %cst_70 : f32 to vector<8x256xf32>
    %257 = arith.subf %256, %255 : vector<8x256xf32>
    %258 = arith.select %229, %257, %253 : vector<8x256xi1>, vector<8x256xf32>
    %cst_71 = arith.constant 0.000000e+00 : f32
    %259 = vector.broadcast %cst_71 : f32 to vector<8x256xf32>
    %260 = arith.cmpf olt, %226, %259 : vector<8x256xf32>
    %cst_72 = arith.constant 0.000000e+00 : f32
    %261 = vector.broadcast %cst_72 : f32 to vector<8x256xf32>
    %262 = arith.subf %261, %258 : vector<8x256xf32>
    %263 = arith.select %260, %262, %258 : vector<8x256xi1>, vector<8x256xf32>
    %264 = arith.addf %215, %263 : vector<8x256xf32>
    %265 = arith.andi %121, %123 : vector<8x256xi1>
    %cst_73 = arith.constant 3.000000e+00 : f32
    %266 = vector.broadcast %cst_73 : f32 to vector<8x256xf32>
    %267 = arith.select %123, %167, %266 : vector<8x256xi1>, vector<8x256xf32>
    %268 = arith.select %121, %159, %267 : vector<8x256xi1>, vector<8x256xf32>
    %269 = arith.select %265, %112, %268 : vector<8x256xi1>, vector<8x256xf32>
    %270 = arith.mulf %269, %132 : vector<8x256xf32>
    %271 = arith.mulf %270, %135 : vector<8x256xf32>
    %cst_74 = arith.constant -1.000000e+00 : f32
    %cst_75 = arith.constant 1.000000e+00 : f32
    %272 = vector.broadcast %cst_74 : f32 to vector<8x256xf32>
    %273 = arith.maximumf %272, %271 : vector<8x256xf32>
    %274 = vector.broadcast %cst_75 : f32 to vector<8x256xf32>
    %275 = arith.minimumf %274, %273 : vector<8x256xf32>
    %276 = math.absf %275 : vector<8x256xf32>
    %cst_76 = arith.constant 5.000000e-01 : f32
    %277 = vector.broadcast %cst_76 : f32 to vector<8x256xf32>
    %278 = arith.cmpf ogt, %276, %277 : vector<8x256xf32>
    %cst_77 = arith.constant 1.000000e+00 : f32
    %279 = vector.broadcast %cst_77 : f32 to vector<8x256xf32>
    %280 = arith.subf %279, %276 : vector<8x256xf32>
    %cst_78 = arith.constant 5.000000e-01 : f32
    %281 = vector.broadcast %cst_78 : f32 to vector<8x256xf32>
    %282 = arith.mulf %280, %281 : vector<8x256xf32>
    %283 = arith.mulf %276, %276 : vector<8x256xf32>
    %284 = arith.select %278, %282, %283 : vector<8x256xi1>, vector<8x256xf32>
    %285 = math.sqrt %282 : vector<8x256xf32>
    %286 = arith.select %278, %285, %276 : vector<8x256xi1>, vector<8x256xf32>
    %cst_79 = arith.constant 4.216320e-02 : f32
    %287 = vector.broadcast %cst_79 : f32 to vector<8x256xf32>
    %288 = arith.mulf %287, %284 : vector<8x256xf32>
    %cst_80 = arith.constant 0.024181312 : f32
    %289 = vector.broadcast %cst_80 : f32 to vector<8x256xf32>
    %290 = arith.addf %288, %289 : vector<8x256xf32>
    %291 = arith.mulf %290, %284 : vector<8x256xf32>
    %cst_81 = arith.constant 0.0454700254 : f32
    %292 = vector.broadcast %cst_81 : f32 to vector<8x256xf32>
    %293 = arith.addf %291, %292 : vector<8x256xf32>
    %294 = arith.mulf %293, %284 : vector<8x256xf32>
    %cst_82 = arith.constant 0.0749530047 : f32
    %295 = vector.broadcast %cst_82 : f32 to vector<8x256xf32>
    %296 = arith.addf %294, %295 : vector<8x256xf32>
    %297 = arith.mulf %296, %284 : vector<8x256xf32>
    %cst_83 = arith.constant 0.166667521 : f32
    %298 = vector.broadcast %cst_83 : f32 to vector<8x256xf32>
    %299 = arith.addf %297, %298 : vector<8x256xf32>
    %300 = arith.mulf %286, %284 : vector<8x256xf32>
    %301 = arith.mulf %300, %299 : vector<8x256xf32>
    %302 = arith.addf %301, %286 : vector<8x256xf32>
    %cst_84 = arith.constant 2.000000e+00 : f32
    %303 = vector.broadcast %cst_84 : f32 to vector<8x256xf32>
    %304 = arith.mulf %303, %302 : vector<8x256xf32>
    %cst_85 = arith.constant 1.57079637 : f32
    %305 = vector.broadcast %cst_85 : f32 to vector<8x256xf32>
    %306 = arith.subf %305, %304 : vector<8x256xf32>
    %307 = arith.select %278, %306, %302 : vector<8x256xi1>, vector<8x256xf32>
    %cst_86 = arith.constant 0.000000e+00 : f32
    %308 = vector.broadcast %cst_86 : f32 to vector<8x256xf32>
    %309 = arith.cmpf olt, %275, %308 : vector<8x256xf32>
    %cst_87 = arith.constant 0.000000e+00 : f32
    %310 = vector.broadcast %cst_87 : f32 to vector<8x256xf32>
    %311 = arith.subf %310, %307 : vector<8x256xf32>
    %312 = arith.select %309, %311, %307 : vector<8x256xi1>, vector<8x256xf32>
    %313 = arith.addf %264, %312 : vector<8x256xf32>
    %314 = arith.andi %123, %117 : vector<8x256xi1>
    %cst_88 = arith.constant 3.000000e+00 : f32
    %315 = vector.broadcast %cst_88 : f32 to vector<8x256xf32>
    %316 = arith.select %117, %143, %315 : vector<8x256xi1>, vector<8x256xf32>
    %317 = arith.select %123, %167, %316 : vector<8x256xi1>, vector<8x256xf32>
    %318 = arith.select %314, %115, %317 : vector<8x256xi1>, vector<8x256xf32>
    %319 = arith.mulf %318, %135 : vector<8x256xf32>
    %320 = arith.mulf %319, %126 : vector<8x256xf32>
    %cst_89 = arith.constant -1.000000e+00 : f32
    %cst_90 = arith.constant 1.000000e+00 : f32
    %321 = vector.broadcast %cst_89 : f32 to vector<8x256xf32>
    %322 = arith.maximumf %321, %320 : vector<8x256xf32>
    %323 = vector.broadcast %cst_90 : f32 to vector<8x256xf32>
    %324 = arith.minimumf %323, %322 : vector<8x256xf32>
    %325 = math.absf %324 : vector<8x256xf32>
    %cst_91 = arith.constant 5.000000e-01 : f32
    %326 = vector.broadcast %cst_91 : f32 to vector<8x256xf32>
    %327 = arith.cmpf ogt, %325, %326 : vector<8x256xf32>
    %cst_92 = arith.constant 1.000000e+00 : f32
    %328 = vector.broadcast %cst_92 : f32 to vector<8x256xf32>
    %329 = arith.subf %328, %325 : vector<8x256xf32>
    %cst_93 = arith.constant 5.000000e-01 : f32
    %330 = vector.broadcast %cst_93 : f32 to vector<8x256xf32>
    %331 = arith.mulf %329, %330 : vector<8x256xf32>
    %332 = arith.mulf %325, %325 : vector<8x256xf32>
    %333 = arith.select %327, %331, %332 : vector<8x256xi1>, vector<8x256xf32>
    %334 = math.sqrt %331 : vector<8x256xf32>
    %335 = arith.select %327, %334, %325 : vector<8x256xi1>, vector<8x256xf32>
    %cst_94 = arith.constant 4.216320e-02 : f32
    %336 = vector.broadcast %cst_94 : f32 to vector<8x256xf32>
    %337 = arith.mulf %336, %333 : vector<8x256xf32>
    %cst_95 = arith.constant 0.024181312 : f32
    %338 = vector.broadcast %cst_95 : f32 to vector<8x256xf32>
    %339 = arith.addf %337, %338 : vector<8x256xf32>
    %340 = arith.mulf %339, %333 : vector<8x256xf32>
    %cst_96 = arith.constant 0.0454700254 : f32
    %341 = vector.broadcast %cst_96 : f32 to vector<8x256xf32>
    %342 = arith.addf %340, %341 : vector<8x256xf32>
    %343 = arith.mulf %342, %333 : vector<8x256xf32>
    %cst_97 = arith.constant 0.0749530047 : f32
    %344 = vector.broadcast %cst_97 : f32 to vector<8x256xf32>
    %345 = arith.addf %343, %344 : vector<8x256xf32>
    %346 = arith.mulf %345, %333 : vector<8x256xf32>
    %cst_98 = arith.constant 0.166667521 : f32
    %347 = vector.broadcast %cst_98 : f32 to vector<8x256xf32>
    %348 = arith.addf %346, %347 : vector<8x256xf32>
    %349 = arith.mulf %335, %333 : vector<8x256xf32>
    %350 = arith.mulf %349, %348 : vector<8x256xf32>
    %351 = arith.addf %350, %335 : vector<8x256xf32>
    %cst_99 = arith.constant 2.000000e+00 : f32
    %352 = vector.broadcast %cst_99 : f32 to vector<8x256xf32>
    %353 = arith.mulf %352, %351 : vector<8x256xf32>
    %cst_100 = arith.constant 1.57079637 : f32
    %354 = vector.broadcast %cst_100 : f32 to vector<8x256xf32>
    %355 = arith.subf %354, %353 : vector<8x256xf32>
    %356 = arith.select %327, %355, %351 : vector<8x256xi1>, vector<8x256xf32>
    %cst_101 = arith.constant 0.000000e+00 : f32
    %357 = vector.broadcast %cst_101 : f32 to vector<8x256xf32>
    %358 = arith.cmpf olt, %324, %357 : vector<8x256xf32>
    %cst_102 = arith.constant 0.000000e+00 : f32
    %359 = vector.broadcast %cst_102 : f32 to vector<8x256xf32>
    %360 = arith.subf %359, %356 : vector<8x256xf32>
    %361 = arith.select %358, %360, %356 : vector<8x256xi1>, vector<8x256xf32>
    %362 = arith.addf %313, %361 : vector<8x256xf32>
    %363 = arith.mulf %40, %38 : vector<8x256xf32>
    %364 = arith.mulf %41, %37 : vector<8x256xf32>
    %365 = arith.subf %363, %364 : vector<8x256xf32>
    %366 = arith.mulf %365, %24 : vector<8x256xf32>
    %367 = arith.mulf %41, %36 : vector<8x256xf32>
    %368 = arith.mulf %39, %38 : vector<8x256xf32>
    %369 = arith.subf %367, %368 : vector<8x256xf32>
    %370 = arith.mulf %369, %25 : vector<8x256xf32>
    %371 = arith.addf %366, %370 : vector<8x256xf32>
    %372 = arith.mulf %39, %37 : vector<8x256xf32>
    %373 = arith.mulf %40, %36 : vector<8x256xf32>
    %374 = arith.subf %372, %373 : vector<8x256xf32>
    %375 = arith.mulf %374, %26 : vector<8x256xf32>
    %376 = arith.addf %371, %375 : vector<8x256xf32>
    %cst_103 = arith.constant 0.000000e+00 : f32
    %377 = vector.broadcast %cst_103 : f32 to vector<8x256xf32>
    %378 = arith.cmpf ole, %376, %377 : vector<8x256xf32>
    %cst_104 = arith.constant 0.000000e+00 : f32
    %379 = vector.broadcast %cst_104 : f32 to vector<8x256xf32>
    %380 = arith.subf %379, %362 : vector<8x256xf32>
    %381 = arith.select %378, %380, %362 : vector<8x256xi1>, vector<8x256xf32>
    %c0_105 = arith.constant 0 : index
    %c0_106 = arith.constant 0 : index
    %382 = vector.load %arg3[%c0_105, %c0_106] : memref<256x25xf32, #tpu.memory_space<vmem>>, vector<256x25xf32>
    %cst_107 = arith.constant dense<0.000000e+00> : vector<8x25xf32>
    %383 = tpu.matmul %381, %382, %cst_107 {dimension_numbers = #tpu.dot_dimension_numbers<[1], [0], [0], [1], [0, 0, 1, 1], [], []>} : vector<8x256xf32>, vector<256x25xf32>, vector<8x25xf32> -> vector<8x25xf32>
    %c0_108 = arith.constant 0 : index
    %c0_109 = arith.constant 0 : index
    %c0_110 = arith.constant 0 : index
    %384 = vector.load %arg4[%c0_108, %c0_109, %c0_110] : memref<1x8x25xf32, #tpu.memory_space<vmem>>, vector<1x8x25xf32>
    %385 = vector.shape_cast %384 : vector<1x8x25xf32> to vector<8x25xf32>
    %386 = vector.shape_cast %383 : vector<8x25xf32> to vector<1x8x25xf32>
    tpu.vector_store %arg4[%c0_108, %c0_109, %c0_110], %386 {strides = array<i32>} : memref<1x8x25xf32, #tpu.memory_space<vmem>>, vector<1x8x25xf32>,
    return
  }
  func.func @transform_0(%arg0: i32, %arg1: i32) -> (i32, i32, i32, i32) {
    %c0_i32 = arith.constant 0 : i32
    %c0_i32_0 = arith.constant 0 : i32
    %c0_i32_1 = arith.constant 0 : i32
    return %arg0, %c0_i32, %arg1, %c0_i32_0 : i32, i32, i32, i32
  }
  func.func @transform_1(%arg0: i32, %arg1: i32) -> (i32, i32) {
    %c0_i32 = arith.constant 0 : i32
    %c0_i32_0 = arith.constant 0 : i32
    %c0_i32_1 = arith.constant 0 : i32
    return %c0_i32, %c0_i32_0 : i32, i32
  }
  func.func @transform_2(%arg0: i32, %arg1: i32) -> (i32, i32, i32) {
    %c0_i32 = arith.constant 0 : i32
    %c0_i32_0 = arith.constant 0 : i32
    return %arg0, %arg1, %c0_i32 : i32, i32, i32
  }
}

</mosaic_0001>

<bundles_post_ra>
// kernel: tpu_custom_call.1
= control target key start
LH: loop header
LB: loop body
LE: loop exit
PB: predicated region body
PF: predicated region fallthrough
CT: control target
= control target key end

     0   :  { %7 = vsyncpa [#allocation3], 0  ;;  %s2626_s0 = inlined_call_operand.hbm [shape: f32[2,12,8,256], index: 0, kind: input, shape index: {}]   ;;  %s2627_s1 = inlined_call_operand.vmem [shape: f32[256,25], index: 1, kind: input, shape index: {}]   ;;  %s2628_s2 = inlined_call_operand.hbm [shape: f32[2,8,25], index: 2, kind: output, shape index: {}]  }
   0x1   :  { %9 = vsyncpa [#allocation3 + $0x1], 0 }
   0x2   :  { %10 = vsyncpa [#allocation4], 0 }
   0x3   :  { %12 = vsyncpa [#allocation4 + $0x1], 0  ;;  %s1380_s9 = smov 0   ;;  %s1382_s10 = smov 0  }
   0x4   :  { %s1384_s11 = smov 0   ;;  %s1386_s12 = smov 0  }
   0x5   :  { %s1388_s13 = smov 0   ;;  %s1390_s14 = smov 0  }
   0x6 LB: > { %s1040_s15 = sadd.s32 4294967295, %s1359_s14   ;;  %s1041_s16 = sadd.s32 4294967294, %s1359_s14   ;;  %s1359_s14 = sphi %s1390_s14, %s18_s14   ;;  %s1355_s13 = sphi %s1388_s13, %s2663_s13   ;;  %s1351_s12 = sphi %s1386_s12, %s2662_s12   ;;  %s1347_s11 = sphi %s1384_s11, %s2661_s11   ;;  %s1343_s10 = sphi %s1382_s10, %s2660_s10   ;;  %s1339_s9 = sphi %s1380_s9, %s2659_s9  }
   0x7   : > { %s30_s17 = sadd.s32 1, %s1355_s13  ;;  %s39_s18 = sadd.s32 1, %s1347_s11 }
   0x8   : > { %p32_p0 = scmp.ge.s32.totalorder %s30_s17, 2  ;;  %p46_p1 = scmp.ne.s32.totalorder %s1347_s11, %s1343_s10 }
   0x9   : > { %p47_p2 = scmp.eq.s32.totalorder %s1359_s14, 0  ;;  %p52_p3 = scmp.ne.s32.totalorder %s1343_s10, %s1339_s9 }
   0xa   : > { %s2665_s17 = smov (%p32_p0, %s30_s17), 0  ;;  %p53_p5 = scmp.eq.s32.totalorder %s1040_s15, 0 }
   0xb   : > { %p1421_p4 = por %p47_p2, %p46_p1  ;;  %s34_s20 = ssub.s32 %s1355_s13, %s2665_s17 }
   0xc   : > { %p99_p6 = scmp.eq.s32.totalorder %s1040_s15, 1  ;;  %p37_p7 = scmp.eq.s32.totalorder %s34_s20, 0 }
   0xd   : > { %p1427_p8 = por %p53_p5, %p52_p3  ;;  %p105_p10 = scmp.eq.s32.totalorder %s1041_s16, 1 }
   0xe   : > { %p1431_p9 = por %p99_p6, %p46_p1  ;;  %p1163_p13 = scmp.lt.s32.totalorder %s1359_s14, 2 }
   0xf   : > { %s1436_s23 = scalar_select %p37_p7, %s1347_s11, %s39_s18  }
  0x10   : > { %s2634_s22 = scalar_select %p1431_p9, 1, 0 }
  0x11   : > { %p1438_p11 = por %p105_p10, %p52_p3  ;;  %s128_s25 = sand.u32 1, %s1347_s11  }
  0x12   : > { %s1148_s26 = smul.u32 192, %s128_s25  ;;  %p1448_p0 = pnand %p1163_p13, %p1421_p4 }
  0x13   : > { %s2635_s24 = scalar_select %p1438_p11, 1, 0 }
  0x14   : > { %s1149_s27 = smul.u32 3072, %s1355_s13  ;;  %s132_s4 = scalar_lea.vmem [#allocation2], %s1148_s26 }
  0x15   : > { %s141_s5 = sshll.u32 %s132_s4, 4  ;;  %s1460_s6 = scalar_lea.sflag [#allocation3], %s128_s25  ;;  %s1457_s5 = int_to_ptr.vmem [resolvable:$true] %s141_s5 }
  0x16   : > { %s1455_s3 = scalar_lea.hbm %s2626_s0, %s1149_s27  ;;  %p1249_p3 = pneg %p1448_p0 }
  0x17   : > { %s1247_s7 = scalar_lea.hbm %s1455_s3, 3072  ;;  %s1252_s16 = scalar_lea.hbm %s2626_s0, 6144 }
  0x18   : > { %p1248_p2 = scmp.ne.s32.totalorder %s1455_s3, %s1247_s7  ;;  %p1253_p6 = scmp.lt.u32.totalorder %s1455_s3, %s2626_s0 }
  0x19   : > { %p1254_p7 = scmp.lt.u32.totalorder %s1252_s16, %s1247_s7  ;;  %p1256_p13 = scmp.lt.u32.totalorder %s1247_s7, %s1455_s3 }
  0x1a   : > { %p1250_p4 = pnand %p1249_p3, %p1248_p2 }
  0x1b   : > { %p1255_p10 = por %p1254_p7, %p1253_p6 }
  0x1c   : > { %p1251_p5 = pneg %p1250_p4 }
  0x1d   : > { %p1257_p12 = por %p1256_p13, %p1255_p10 }
  0x1f   : > { %p1258_p1 = pnand %p1257_p12, %p1251_p5 }
  0x21   : > { %1261 = shalt.err (!%p1258_p1)
}
  0x22   : > { %s1262_s20 = scalar_lea.vmem %s1457_s5, 3072  ;;  %s1361_s25 = smov [#allocation2]  }
  0x23   : > { %p1263_p2 = scmp.ne.s32.totalorder %s1457_s5, %s1262_s20  ;;  %s1267_s26 = sshll.u32 %s1361_s25, 4  ;;  %s1268_s26 = int_to_ptr.vmem [resolvable:$false] %s1267_s26 }
  0x24   : > { %s1269_s27 = scalar_lea.vmem %s1268_s26, 6144  ;;  %p1270_p9 = scmp.lt.s32.totalorder %s1457_s5, %s1268_s26 }
  0x25   : > { %p1265_p4 = pnand %p1263_p2, %p1249_p3  ;;  %p1271_p6 = scmp.lt.s32.totalorder %s1269_s27, %s1262_s20 }
  0x27   : > { %p1266_p11 = pneg %p1265_p4  ;;  %p1272_p7 = por %p1271_p6, %p1270_p9 }
  0x29   : > { %p1273_p10 = pnand %p1272_p7, %p1266_p11 }
  0x2b   : > { %1276 = shalt.err (!%p1273_p10)
}
  0x2c   : > { %s1362_s29 = smov 256   ;;  %s1363_s30 = smov 16  }
  0x2d   : > { %1158 = dma.hbm_to_vmem [thread:$0]  (!%p1448_p0), %s1455_s3, 3072, %s1457_s5, %s1460_s6, %s1362_s29, %s1362_s29, %s1363_s30  }
  0x2e   : > { %p149_p12 = scmp.lt.s32.totalorder %s1359_s14, 3  ;;  %p2637_p1 = scmp.ge.s32.totalorder %s1359_s14, 1 }
  0x30   : > { %p150_p3 = pnand %p2637_p1, %p149_p12 }
  0x31   : > { %s1492_s4 = sand.u32 (!%p150_p3), 1, %s1343_s10  }
  0x32   : > { %153 = sbr.rel (%p150_p3) target bundleno = 469 (0x1d5), region = 28  ;;  %s156_s8 = scalar_lea.sflag (!%p150_p3), [#allocation3], %s1492_s4 }
  0x33   : > { %s1150_s7 = smul.u32 (!%p150_p3), 192, %s1492_s4 }
  0x35   : > { %s1496_s15 = scalar_lea.vmem (!%p150_p3), [#allocation2], %s1150_s7 }
  0x39   : > { %1330 = dma.done.wait (%p1427_p8), %s156_s8, 3072  }
  0x3a   : > { %1332 = vsyncadd (%p1427_p8), %s156_s8, 4294964224  ;;  %v855_v0 = vld [vmem:[%s2627_s1 + $0x80] sm:$0xff]  ;;  %v856_v1 = vld [vmem:[%s2627_s1 + $0x88] sm:$0xff]  ;;  %s1078_s28 = sshll.u32 %s1351_s12, 7  ;;  %s944_s19 = scalar_lea.sflag [#allocation4], %s1492_s4 }
  0x3b   : > { %v839_v2 = vld [vmem:[%s2627_s1] sm:$0xff]  ;;  %v1116_v3 = vpack.c.bf16 %v856_v1, %v855_v0  ;;  %v840_v4 = vld [vmem:[%s2627_s1 + $0x8] sm:$0xff]  ;;  %v857_v5 = vld [vmem:[%s2627_s1 + $0x90] sm:$0xff]  ;;  %s2577_s18 = scalar_lea.hbm %s2628_s2, %s1078_s28  ;;  %p2656_p9 = scmp.ne.s32.totalorder %s2634_s22, 0 }
  0x3c   : > { %v858_v6 = vld [vmem:[%s2627_s1 + $0x98] sm:$0xff]  ;;  %v1118_v7 = vpack.c.bf16 %v840_v4, %v839_v2  ;;  %v841_v9 = vld [vmem:[%s2627_s1 + $0x10] sm:$0xff]  ;;  %v859_v11 = vld [vmem:[%s2627_s1 + $0xa0] sm:$0xff]  ;;  %s1364_s12 = smov [#allocation5]  }
  0x3d   : > { %v1120_v8 = vpack.c.bf16 %v858_v6, %v857_v5  ;;  %v842_v10 = vld [vmem:[%s2627_s1 + $0x18] sm:$0xff]  ;;  %1117 = vmatprep.subr.bf16.mxu0 %v1116_v3  ;;  %v860_v12 = vld [vmem:[%s2627_s1 + $0xa8] sm:$0xff]  ;;  %v843_v13 = vld [vmem:[%s2627_s1 + $0x20] sm:$0xff]  ;;  %s1281_s25 = sshll.u32 %s1364_s12, 4  ;;  %s1282_s25 = int_to_ptr.vmem [resolvable:$false] %s1281_s25 }
  0x3e   : > { %1119 = vmatpush3.bf16.msra.mxu0 %v1118_v7  ;;  %v1122_v14 = vpack.c.bf16 %v842_v10, %v841_v9  ;;  %v844_v15 = vld [vmem:[%s2627_s1 + $0x28] sm:$0xff]  ;;  %v861_v16 = vld [vmem:[%s2627_s1 + $0xb0] sm:$0xff]  ;;  %v862_v17 = vld [vmem:[%s2627_s1 + $0xb8] sm:$0xff]  ;;  %v1124_v18 = vpack.c.bf16 %v860_v12, %v859_v11  ;;  %s1283_s21 = scalar_lea.vmem %s1282_s25, 256 }
  0x3f   : > { %1121 = vmatprep.subr.bf16.mxu0 %v1120_v8  ;;  %v845_v19 = vld [vmem:[%s2627_s1 + $0x30] sm:$0xff]  ;;  %v846_v20 = vld [vmem:[%s2627_s1 + $0x38] sm:$0xff]  ;;  %v863_v21 = vld [vmem:[%s2627_s1 + $0xc0] sm:$0xff]  ;;  %v1126_v29 = vpack.c.bf16 %v844_v15, %v843_v13  ;;  %v1128_v33 = vpack.c.bf16 %v862_v17, %v861_v16 }
  0x40   : > { %v864_v22 = vld [vmem:[%s2627_s1 + $0xc8] sm:$0xff]  ;;  %v1559_v23 = vld [vmem:[%s2627_s1 + $0x40] sm:$0xff]  ;;  %v1569_v25 = vld [vmem:[%s2627_s1 + $0xd0] sm:$0xff]  ;;  %v1130_v37 = vpack.c.bf16 %v846_v20, %v845_v19 }
  0x41   : > { %v1564_v24 = vld [vmem:[%s2627_s1 + $0x48] sm:$0xff]  ;;  %v1574_v26 = vld [vmem:[%s2627_s1 + $0xd8] sm:$0xff]  ;;  %v1579_v27 = vld [vmem:[%s2627_s1 + $0x50] sm:$0xff]  ;;  %v1132_v38 = vpack.c.bf16 %v864_v22, %v863_v21 }
  0x42   : > { %v1584_v28 = vld [vmem:[%s2627_s1 + $0x58] sm:$0xff]  ;;  %1123 = vmatpush3.bf16.msra.mxu0 %v1122_v14  ;;  %v1589_v30 = vld [vmem:[%s2627_s1 + $0xe0] sm:$0xff]  ;;  %v1594_v31 = vld [vmem:[%s2627_s1 + $0xe8] sm:$0xff]  ;;  %v1134_v42 = vpack.c.bf16 %v1564_v24, %v1559_v23  ;;  %v1136_v43 = vpack.c.bf16 %v1574_v26, %v1569_v25 }
  0x43   : > { %v1599_v32 = vld [vmem:[%s2627_s1 + $0x60] sm:$0xff]  ;;  %1125 = vmatprep.subr.bf16.mxu0 %v1124_v18  ;;  %v1604_v34 = vld [vmem:[%s2627_s1 + $0x68] sm:$0xff]  ;;  %v1609_v35 = vld [vmem:[%s2627_s1 + $0xf0] sm:$0xff]  ;;  %v1138_v44 = vpack.c.bf16 %v1584_v28, %v1579_v27  ;;  %v1140_v45 = vpack.c.bf16 %v1594_v31, %v1589_v30 }
  0x44   : > { %v1614_v36 = vld [vmem:[%s2627_s1 + $0xf8] sm:$0xff]  ;;  %v1619_v39 = vld [vmem:[%s2627_s1 + $0x70] sm:$0xff]  ;;  %v181_v41 = vld [vmem:[%s1496_s15 + $0x8] sm:$0xff]  ;;  %v1142_v49 = vpack.c.bf16 %v1604_v34, %v1599_v32 }
  0x45   : > { %v1624_v40 = vld [vmem:[%s2627_s1 + $0x78] sm:$0xff]  ;;  %v1050_v47 = vld [vmem:[%s1496_s15 + $0x28] sm:$0xff]  ;;  %v1144_v50 = vpack.c.bf16 %v1614_v36, %v1609_v35 }
  0x46   : > { %v1048_v46 = vld [vmem:[%s1496_s15 + $0x18] sm:$0xff]  ;;  %1127 = vmatpush3.bf16.msra.mxu0 %v1126_v29  ;;  %v1146_v51 = vpack.c.bf16 %v1624_v40, %v1619_v39  ;;  %v1054_v52 = vld [vmem:[%s1496_s15 + $0x48] sm:$0xff] }
  0x47   : > { %v1052_v48 = vld [vmem:[%s1496_s15 + $0x38] sm:$0xff]  ;;  %v1058_v54 = vld [vmem:[%s1496_s15 + $0x68] sm:$0xff]  ;;  %1129 = vmatprep.subr.bf16.mxu0 %v1128_v33  ;;  %v1656_v61 = vsub.f32 %v1054_v52, %v1048_v46 }
  0x48   : > { %v1056_v53 = vld [vmem:[%s1496_s15 + $0x58] sm:$0xff]  ;;  %v1647_v55 = vsub.f32 %v1052_v48, %v181_v41  ;;  %v1062_v57 = vld [vmem:[%s1496_s15 + $0x88] sm:$0xff]  ;;  %v1652_v59 = vsub.f32 %v1058_v54, %v181_v41  ;;  %v1654_v60 = vsub.f32 %v1058_v54, %v1052_v48 }
  0x49   : > { %v1060_v56 = vld [vmem:[%s1496_s15 + $0x78] sm:$0xff]  ;;  %v1658_v62 = vsub.f32 %v1056_v53, %v1050_v47  ;;  %v1066_v63 = vld [vmem:[%s1496_s15 + $0xa8] sm:$0xff]  ;;  %v1664_v2 = vsub.f32 %v1062_v57, %v1050_v47  ;;  %v1674_v7 = vsub.f32 %v1062_v57, %v1056_v53 }
  0x4a   : > { %v1064_v58 = vld [vmem:[%s1496_s15 + $0x98] sm:$0xff]  ;;  %v1662_v1 = vsub.f32 %v1060_v56, %v1048_v46  ;;  %v1668_v4 = vsub.f32 %v1060_v56, %v1054_v52  ;;  %v1670_v5 = vsub.f32 %v1066_v63, %v1048_v46  ;;  %1131 = vmatpush3.bf16.msra.mxu0 %v1130_v37  ;;  %v1678_v9 = vsub.f32 %v1066_v63, %v1054_v52 }
  0x4b   : > { %v1068_v0 = vld [vmem:[%s1496_s15 + $0xb8] sm:$0xff]  ;;  %v1666_v3 = vsub.f32 %v1064_v58, %v181_v41  ;;  %v1676_v8 = vsub.f32 %v1064_v58, %v1052_v48  ;;  %v1682_v11 = vsub.f32 %v1064_v58, %v1058_v54  ;;  %v1684_v12 = vsub.f32 %v1066_v63, %v1060_v56  ;;  %1133 = vmatprep.subr.bf16.mxu0 %v1132_v38 }
  0x4c   : > { %v1672_v6 = vsub.f32 %v1068_v0, %v1050_v47  ;;  %v1680_v10 = vsub.f32 %v1068_v0, %v1056_v53  ;;  %v1686_v13 = vsub.f32 %v1068_v0, %v1062_v57  ;;  %v252_v14 = vmul.f32 %v1652_v59, %v1652_v59 }
  0x4d   : > { %v254_v15 = vmul.f32 %v1662_v1, %v1662_v1  ;;  %v258_v16 = vmul.f32 %v1664_v2, %v1664_v2  ;;  %v262_v17 = vmul.f32 %v1666_v3, %v1666_v3  ;;  %v264_v18 = vmul.f32 %v1670_v5, %v1670_v5 }
  0x4e   : > { %v268_v19 = vmul.f32 %v1672_v6, %v1672_v6  ;;  %v272_v20 = vmul.f32 %v1676_v8, %v1676_v8  ;;  %v274_v22 = vmul.f32 %v1678_v9, %v1678_v9  ;;  %v278_v23 = vmul.f32 %v1680_v10, %v1680_v10  ;;  %1135 = vmatpush3.bf16.msra.mxu0 %v1134_v42 }
  0x4f   : > { %v256_v21 = vadd.f32 %v254_v15, %v252_v14  ;;  %v282_v24 = vmul.f32 %v1654_v60, %v1654_v60  ;;  %v266_v25 = vadd.f32 %v264_v18, %v262_v17  ;;  %v284_v26 = vmul.f32 %v1668_v4, %v1668_v4  ;;  %1137 = vmatprep.subr.bf16.mxu0 %v1136_v43 }
  0x50   : > { %v288_v29 = vmul.f32 %v1674_v7, %v1674_v7  ;;  %v292_v33 = vmul.f32 %v1666_v3, %v1652_v59  ;;  %v276_v38 = vadd.f32 %v274_v22, %v272_v20  ;;  %v294_v41 = vmul.f32 %v1670_v5, %v1662_v1 }
  0x51   : > { %v260_v37 = vadd.f32 %v258_v16, %v256_v21  ;;  %v298_v46 = vmul.f32 %v1672_v6, %v1664_v2  ;;  %v270_v42 = vadd.f32 %v268_v19, %v266_v25  ;;  %v286_v47 = vadd.f32 %v284_v26, %v282_v24 }
  0x52   : > { %v302_v48 = vmul.f32 %v1676_v8, %v1652_v59  ;;  %v304_v52 = vmul.f32 %v1678_v9, %v1662_v1  ;;  %v280_v53 = vadd.f32 %v278_v23, %v276_v38  ;;  %v296_v54 = vadd.f32 %v294_v41, %v292_v33  ;;  %1139 = vmatpush3.bf16.msra.mxu0 %v1138_v44 }
  0x53   : > { %v308_v43 = vmul.f32 %v1680_v10, %v1664_v2  ;;  %v312_v56 = vmul.f32 %v1654_v60, %v1652_v59  ;;  %v290_v57 = vadd.f32 %v288_v29, %v286_v47  ;;  %v314_v63 = vmul.f32 %v1668_v4, %v1662_v1  ;;  %1141 = vmatprep.subr.bf16.mxu0 %v1140_v45 }
  0x54   : > { %v306_v58 = vadd.f32 %v304_v52, %v302_v48  ;;  %v318_v0 = vmul.f32 %v1674_v7, %v1664_v2  ;;  %v300_v14 = vadd.f32 %v298_v46, %v296_v54  ;;  %v322_v15 = vmul.f32 %v1676_v8, %v1666_v3 }
  0x55   : > { %v324_v27 = vmul.f32 %v1678_v9, %v1670_v5  ;;  %v328_v28 = vmul.f32 %v1680_v10, %v1672_v6  ;;  %v316_v16 = vadd.f32 %v314_v63, %v312_v56  ;;  %v332_v17 = vmul.f32 %v1654_v60, %v1666_v3 }
  0x56   : > { %v310_v44 = vadd.f32 %v308_v43, %v306_v58  ;;  %v334_v18 = vmul.f32 %v1668_v4, %v1670_v5  ;;  %v338_v31 = vmul.f32 %v1674_v7, %v1672_v6  ;;  %v342_v45 = vmul.f32 %v1676_v8, %v1654_v60  ;;  %1143 = vmatpush3.bf16.msra.mxu0 %v1142_v49 }
  0x57   : > { %v326_v30 = vadd.f32 %v324_v27, %v322_v15  ;;  %v344_v19 = vmul.f32 %v1678_v9, %v1668_v4  ;;  %v320_v20 = vadd.f32 %v318_v0, %v316_v16  ;;  %v348_v22 = vmul.f32 %v1680_v10, %v1674_v7  ;;  %1145 = vmatprep.subr.bf16.mxu0 %v1144_v50 }
  0x58   : > { %v336_v21 = vadd.f32 %v334_v18, %v332_v17  ;;  %v352_v23 = vmul.f32 %v270_v42, %v260_v37  ;;  %v354_v26 = vmul.f32 %v300_v14, %v300_v14  ;;  %v358_v29 = vmul.f32 %v280_v53, %v270_v42 }
  0x59   : > { %v330_v24 = vadd.f32 %v328_v28, %v326_v30  ;;  %v346_v25 = vadd.f32 %v344_v19, %v342_v45  ;;  %v364_v38 = vmul.f32 %v290_v57, %v280_v53  ;;  %v370_v41 = vmul.f32 %v290_v57, %v260_v37 }
  0x5a   : > { %v340_v33 = vadd.f32 %v338_v31, %v336_v21  ;;  %v372_v46 = vmul.f32 %v320_v20, %v320_v20  ;;  %v1760_v34 = vsub.f32 %v352_v23, %v354_v26  ;;  %1147 = vmatpush3.bf16.msra.mxu0 %v1146_v51  ;;  %v1769_v36 = vmul.f32 %v310_v44, %v270_v42 }
  0x5b   : > { %v350_v32 = vadd.f32 %v348_v22, %v346_v25  ;;  %v360_v49 = vmul.f32 %v330_v24, %v330_v24  ;;  %v1762_v47 = vmul.f32 %v330_v24, %v300_v14  ;;  %v1773_v48 = vmul.f32 %v310_v44, %v290_v57 }
  0x5c   : > { %v1767_v35 = vsub.f32 %v370_v41, %v372_v46  ;;  %v1771_v50 = vmul.f32 %v340_v33, %v280_v53  ;;  %v1783_v39 = vmul.f32 %v320_v20, %v300_v14  ;;  %v1785_v40 = vmul.f32 %v340_v33, %v260_v37 }
  0x5d   : > { %v1775_v52 = vsub.f32 %v358_v29, %v360_v49  ;;  %v366_v54 = vmul.f32 %v350_v32, %v350_v32  ;;  %v1777_v43 = vmul.f32 %v350_v32, %v330_v24  ;;  %v1779_v56 = vmul.f32 %v350_v32, %v320_v20 }
  0x5e   : > { %v380_v58 = vsub.f32 %v1762_v47, %v1769_v36  ;;  %vm400_vm0 = vcmp.gt.f32.partialorder %v1760_v34, 0.0  ;;  %v398_v57 = vsub.f32 %v1783_v39, %v1785_v40  ;;  %vm406_vm2 = vcmp.gt.f32.partialorder %v1767_v35, 0.0 }
  0x5f   : > { %v1788_v51 = vsub.f32 %v364_v38, %v366_v54  ;;  %v386_v42 = vsub.f32 %v1777_v43, %v1771_v50  ;;  %v392_v53 = vsub.f32 %v1779_v56, %v1773_v48  ;;  %vm402_vm1 = vcmp.gt.f32.partialorder %v1775_v52, 0.0  ;;  %vm726_vm6 = vmand %vm406_vm2, %vm400_vm0 }
  0x60   : > { %v408_v37 = vsel %vm400_vm0, %v1760_v34, 1.0  ;;  %v412_v63 = vsel %vm402_vm1, %v1775_v52, 1.0  ;;  %v420_v0 = vsel %vm406_vm2, %v1767_v35, 1.0  ;;  %v424_v14 = vsub.f32 %v1670_v5, %v1672_v6  ;;  %vm1853_vm4 = vmand %vm400_vm0, %vm402_vm1 }
  0x61   : > { %vm404_vm3 = vcmp.gt.f32.partialorder %v1788_v51, 0.0  ;;  %1215 = vrsqrt.f32 %v408_v37  ;;  %v426_v27 = vsub.f32 %v1672_v6, %v1666_v3  ;;  %v428_v28 = vsub.f32 %v1666_v3, %v1670_v5 }
  0x62   : > { %1217 = vrsqrt.f32 %v412_v63  ;;  %v416_v15 = vsel %vm404_vm3, %v1788_v51, 1.0  ;;  %v430_v44 = vmul.f32 %v424_v14, %v1652_v59  ;;  %v440_v16 = vsub.f32 %v1678_v9, %v1680_v10  ;;  %vm1873_vm5 = vmand %vm402_vm1, %vm404_vm3 }
  0x63   : > { %1219 = vrsqrt.f32 %v416_v15  ;;  %v442_v17 = vsub.f32 %v1680_v10, %v1676_v8  ;;  %v432_v18 = vmul.f32 %v426_v27, %v1662_v1  ;;  %v436_v30 = vmul.f32 %v428_v28, %v1664_v2  ;;  %vm646_vm7 = vmand %vm404_vm3, %vm406_vm2 }
  0x64   : > { %1221 = vrsqrt.f32 %v420_v0  ;;  %v444_v31 = vsub.f32 %v1676_v8, %v1678_v9  ;;  %v446_v45 = vmul.f32 %v440_v16, %v1666_v3  ;;  %v456_v20 = vsub.f32 %v1668_v4, %v1674_v7 }
  0x65   : > { %v448_v19 = vmul.f32 %v442_v17, %v1670_v5  ;;  %v458_v21 = vsub.f32 %v1674_v7, %v1654_v60  ;;  %v434_v22 = vadd.f32 %v432_v18, %v430_v44  ;;  %v460_v24 = vsub.f32 %v1654_v60, %v1668_v4 }
  0x66   : > { %v452_v23 = vmul.f32 %v444_v31, %v1672_v6  ;;  %v472_v25 = vsub.f32 %v1662_v1, %v1664_v2  ;;  %v462_v3 = vmul.f32 %v456_v20, %v1676_v8  ;;  %v474_v29 = vsub.f32 %v1664_v2, %v1652_v59 }
  0x67   : > { %v450_v26 = vadd.f32 %v448_v19, %v446_v45  ;;  %v464_v5 = vmul.f32 %v458_v21, %v1678_v9  ;;  %v438_v33 = vadd.f32 %v436_v30, %v434_v22  ;;  %v468_v38 = vmul.f32 %v460_v24, %v1680_v10  ;;  %v1939_v22 = vld [vmem:[%s1496_s15 + $0x10] sm:$0xff] }
  0x68   : > { %v476_v6 = vsub.f32 %v1652_v59, %v1662_v1  ;;  %v478_v41 = vmul.f32 %v472_v25, %v1654_v60  ;;  %v480_v49 = vmul.f32 %v474_v29, %v1668_v4  ;;  %v806_v8 = vmul.f32 %v1684_v12, %v1658_v62  ;;  %v1945_v24 = vld [vmem:[%s1496_s15 + $0x70] sm:$0xff]  ;;  %v1958_v29 = vld [vmem:[%s1496_s15 + $0x80] sm:$0xff] }
  0x69   : > { %v454_v46 = vadd.f32 %v452_v23, %v450_v26  ;;  %v466_v32 = vadd.f32 %v464_v5, %v462_v3  ;;  %v728_v60 = vsel %vm400_vm0, %v438_v33, 3.0  ;;  %v808_v54 = vmul.f32 %v1686_v13, %v1656_v61  ;;  %v1942_v23 = vld [vmem:[%s1496_s15 + $0x60] sm:$0xff] }
  0x6a   : > { %v484_v9 = vmul.f32 %v476_v6, %v1674_v7  ;;  %v814_v4 = vmul.f32 %v1686_v13, %v1647_v55  ;;  %v482_v7 = vadd.f32 %v480_v49, %v478_v41  ;;  %v816_v14 = vmul.f32 %v1682_v11, %v1658_v62  ;;  %v1955_v5 = vld [vmem:[%s1496_s15 + $0x20] sm:$0xff]  ;;  %v1967_v6 = vld [vmem:[%s1496_s15 + $0x90] sm:$0xff] }
  0x6b   : > { %v1216_v37 = vpop.eup %1215  ;;  %v470_v63 = vadd.f32 %v468_v38, %v466_v32  ;;  %v490_v0 = vsel %vm402_vm1, %v454_v46, 3.0  ;;  %v810_v13 = vsub.f32 %v806_v8, %v808_v54  ;;  %v824_v44 = vmul.f32 %v1682_v11, %v1656_v61  ;;  %v1973_v32 = vld [vmem:[%s1496_s15 + $0xa0] sm:$0xff] }
  0x6c   : > { %v1218_v15 = vpop.eup %1217  ;;  %v492_v27 = vsel %vm400_vm0, %v438_v33, %v490_v0  ;;  %v826_v16 = vmul.f32 %v1684_v12, %v1647_v55  ;;  %v486_v17 = vadd.f32 %v484_v9, %v482_v7  ;;  %v818_v61 = vsub.f32 %v814_v4, %v816_v14 }
  0x6d   : > { %v1220_v62 = vpop.eup %1219  ;;  %v494_v18 = vsel %vm1853_vm4, %v380_v58, %v492_v27  ;;  %v568_v30 = vsel %vm404_vm3, %v470_v63, 3.0  ;;  %v812_v12 = vmul.f32 %v810_v13, %v1652_v59  ;;  %v1981_v8 = vsub.f32 %v1945_v24, %v1939_v22 }
  0x6e   : > { %v1222_v11 = vpop.eup %1221  ;;  %v496_v31 = vmul.f32 %v1216_v37, %v494_v18  ;;  %v570_v55 = vsel %vm402_vm1, %v454_v46, %v568_v30  ;;  %v828_v47 = vsub.f32 %v824_v44, %v826_v16  ;;  %v648_v36 = vsel %vm406_vm2, %v486_v17, 3.0 }
  0x6f   : > { %v572_v34 = vsel %vm1873_vm5, %v386_v42, %v570_v55  ;;  %v730_v52 = vsel %vm406_vm2, %v486_v17, %v728_v60  ;;  %v820_v58 = vmul.f32 %v818_v61, %v1662_v1  ;;  %v650_v59 = vsel %vm404_vm3, %v470_v63, %v648_v36  ;;  %v2050_v55 = vld [vmem:[%s1496_s15 + $0xb0] sm:$0xff] }
  0x70   : > { %v1909_v45 = vmul.f32 %v1218_v15, %v496_v31  ;;  %v574_v19 = vmul.f32 %v1218_v15, %v572_v34  ;;  %v732_v50 = vsel %vm726_vm6, %v398_v57, %v730_v52  ;;  %v652_v35 = vsel %vm646_vm7, %v392_v53, %v650_v59 }
  0x71   : > { %v734_v43 = vmul.f32 %v1222_v11, %v732_v50  ;;  %v822_v1 = vadd.f32 %v820_v58, %v812_v12  ;;  %v830_v42 = vmul.f32 %v828_v47, %v1664_v2  ;;  %v654_v21 = vmul.f32 %v1220_v62, %v652_v35  ;;  %v1935_v2 = vld [vmem:[%s1496_s15] sm:$0xff] }
  0x72   : > { %v1070_v20 = vclamps-f32 %v1909_v45, 1.0  ;;  %v1921_v51 = vmul.f32 %v1220_v62, %v574_v19  ;;  %v1977_v49 = vsub.f32 %v1942_v23, %v1935_v2  ;;  %v1992_v54 = vsub.f32 %v1958_v29, %v1955_v5  ;;  %v1051_v19 = vld [vmem:[%s1496_s15 + $0x30] sm:$0xff]  ;;  %v1053_v35 = vld [vmem:[%s1496_s15 + $0x40] sm:$0xff] }
  0x73   : > { %v1923_v39 = vmul.f32 %v1216_v37, %v734_v43  ;;  %v1925_v40 = vadd.f32 %v830_v42, %v822_v1  ;;  %v1932_v53 = vmul.f32 %v1222_v11, %v654_v21  ;;  %v2003_v37 = vsub.f32 %v1967_v6, %v1935_v2  ;;  %v1055_v43 = vld [vmem:[%s1496_s15 + $0x50] sm:$0xff]  ;;  %s1046_s15 = sshll.u32 %s1492_s4, 3 }
  0x74   : > { %v1929_v48 = vand.u32 2147483647, %v1070_v20  ;;  %v1072_v56 = vclamps-f32 %v1921_v51, 1.0  ;;  %v2011_v0 = vsub.f32 %v1973_v32, %v1939_v22  ;;  %v2067_v1 = vsub.f32 %v2050_v55, %v1955_v5  ;;  %s179_s3 = scalar_lea.vmem [#allocation5], %s1046_s15 }
  0x75   : > { %v2630_v57 = vclamps-f32 %v1923_v39, 1.0  ;;  %v2631_v33 = vclamps-f32 %v1932_v53, 1.0  ;;  %v2070_v42 = vsub.f32 %v1942_v23, %v1051_v19  ;;  %vm2120_vm4 = vcmp.lt.f32.partialorder %v1070_v20, 0.0  ;;  %s958_s5 = sshll.u32 %s179_s3, 4  ;;  %s2579_s5 = int_to_ptr.vmem [resolvable:$true] %s958_s5 }
  0x76   : > { %v508_v25 = vsub.f32 1.0, %v1929_v48  ;;  %v512_v26 = vmul.f32 %v1929_v48, %v1929_v48  ;;  %v1952_v3 = vand.u32 2147483647, %v1072_v56  ;;  %vm506_vm8 = vcmp.gt.f32.partialorder %v1929_v48, 0.5  ;;  %s1277_s20 = scalar_lea.vmem %s2579_s5, 128  ;;  %p1284_p5 = scmp.lt.s32.totalorder %s2579_s5, %s1282_s25 }
  0x77   : > { %v1964_v38 = vand.u32 2147483647, %v2630_v57  ;;  %v1987_v10 = vand.u32 2147483647, %v2631_v33  ;;  %vm2146_vm5 = vcmp.lt.f32.partialorder %v1072_v56, 0.0  ;;  %v2161_v56 = vsub.f32 %v1967_v6, %v1942_v23  ;;  %p1278_p8 = scmp.ne.s32.totalorder %s2579_s5, %s1277_s20  ;;  %p1285_p13 = scmp.lt.s32.totalorder %s1283_s21, %s1277_s20 }
  0x78   : > { %v1969_v41 = vmul.f32 0.5, %v508_v25  ;;  %v586_v46 = vsub.f32 1.0, %v1952_v3  ;;  %v590_v9 = vmul.f32 %v1952_v3, %v1952_v3  ;;  %vm584_vm9 = vcmp.gt.f32.partialorder %v1952_v3, 0.5 }
  0x79   : > { %v746_v60 = vsub.f32 1.0, %v1964_v38  ;;  %vm744_vm10 = vcmp.gt.f32.partialorder %v1964_v38, 0.5  ;;  %v666_v14 = vsub.f32 1.0, %v1987_v10  ;;  %v670_v15 = vmul.f32 %v1987_v10, %v1987_v10  ;;  %p1279_p11 = pnand %p1278_p8, %p2656_p9  ;;  %p1286_p2 = por %p1285_p13, %p1284_p5 }
  0x7a   : > { %v1997_v4 = vsel %vm506_vm8, %v1969_v41, %v512_v26  ;;  %1223 = vrsqrt.f32 %v1969_v41  ;;  %v2006_v7 = vmul.f32 0.5, %v586_v46  ;;  %vm524_vm11 = vcmp.eq.f32.partialorder %v1969_v41, inf }
  0x7b   : > { %v532_v63 = vmul.f32 0.0421632, %v1997_v4  ;;  %v2017_v27 = vmul.f32 0.5, %v746_v60  ;;  %v750_v28 = vmul.f32 %v1964_v38, %v1964_v38  ;;  %vm664_vm12 = vcmp.gt.f32.partialorder %v1987_v10, 0.5  ;;  %p1280_p0 = pneg %p1279_p11 }
  0x7c   : > { %v2024_v44 = vsel %vm584_vm9, %v2006_v7, %v590_v9  ;;  %1225 = vrsqrt.f32 %v2006_v7  ;;  %vm526_vm13 = vcmp.eq.f32.partialorder %v1969_v41, 0.0  ;;  %v527_v16 = vand.u32 2147483648, %v1969_v41 }
  0x7d   : > { %v534_v13 = vadd.f32 0.024181312, %v532_v63  ;;  %v610_v62 = vmul.f32 0.0421632, %v2024_v44  ;;  %v2031_v17 = vmul.f32 0.5, %v666_v14  ;;  %vm602_vm14 = vcmp.eq.f32.partialorder %v2006_v7, inf  ;;  %p1287_p4 = pnand %p1286_p2, %p1280_p0 }
  0x7e   : > { %v2038_v30 = vsel %vm744_vm10, %v2017_v27, %v750_v28  ;;  %1227 = vrsqrt.f32 %v2017_v27  ;;  %vm604_vm15 = vcmp.eq.f32.partialorder %v2006_v7, 0.0  ;;  %v605_v61 = vand.u32 2147483648, %v2006_v7 }
  0x7f   : > { %v536_v18 = vmul.f32 %v534_v13, %v1997_v4  ;;  %v612_v11 = vadd.f32 0.024181312, %v610_v62  ;;  %v2046_v31 = vsel %vm664_vm12, %v2031_v17, %v670_v15  ;;  %1229 = vrsqrt.f32 %v2031_v17 }
  0x80   : > { %v685_v47 = vand.u32 2147483648, %v2031_v17  ;;  %v690_v34 = vmul.f32 0.0421632, %v2046_v31  ;;  %vm762_vm0 = vcmp.eq.f32.partialorder %v2017_v27, inf  ;;  %vm682_vm1 = vcmp.eq.f32.partialorder %v2031_v17, inf }
  0x81   : > { %v538_v12 = vadd.f32 0.045470025, %v536_v18  ;;  %v614_v36 = vmul.f32 %v612_v11, %v2024_v44  ;;  %vm764_vm2 = vcmp.eq.f32.partialorder %v2017_v27, 0.0  ;;  %v765_v52 = vand.u32 2147483648, %v2017_v27 }
  0x82   : > { %v770_v58 = vmul.f32 0.0421632, %v2038_v30  ;;  %vm684_vm3 = vcmp.eq.f32.partialorder %v2031_v17, 0.0  ;;  %v692_v50 = vadd.f32 0.024181312, %v690_v34  ;;  %v2073_v46 = vsub.f32 %v1945_v24, %v1053_v35 }
  0x83   : > { %v540_v59 = vmul.f32 %v538_v12, %v1997_v4  ;;  %v616_v25 = vadd.f32 0.045470025, %v614_v36  ;;  %v2076_v9 = vsub.f32 %v1958_v29, %v1055_v43  ;;  %v2081_v15 = vsub.f32 %v1967_v6, %v1051_v19 }
  0x84   : > { %v1224_v21 = vpop.eup %1223  ;;  %v772_v26 = vadd.f32 0.024181312, %v770_v58  ;;  %v694_v14 = vmul.f32 %v692_v50, %v2046_v31  ;;  %v2086_v62 = vsub.f32 %v1973_v32, %v1053_v35  ;;  %v2089_v18 = vsub.f32 %v2050_v55, %v1055_v43 }
  0x85   : > { %v523_v60 = vmul.f32 %v1224_v21, %v1969_v41  ;;  %v542_v63 = vadd.f32 0.074953005, %v540_v59  ;;  %v618_v28 = vmul.f32 %v616_v25, %v2024_v44  ;;  %v2096_v58 = vsub.f32 %v1051_v19, %v1935_v2 }
  0x86   : > { %v774_v13 = vmul.f32 %v772_v26, %v2038_v30  ;;  %v1226_v11 = vpop.eup %1225  ;;  %v696_v36 = vadd.f32 0.045470025, %v694_v14  ;;  %v251_v23 = vmul.f32 %v1977_v49, %v1977_v49 }
  0x87   : > { %v525_v12 = vsel %vm524_vm11, %v1969_v41, %v523_v60  ;;  %v544_v34 = vmul.f32 %v542_v63, %v1997_v4  ;;  %v601_v50 = vmul.f32 %v1226_v11, %v2006_v7  ;;  %v620_v21 = vadd.f32 0.074953005, %v618_v28 }
  0x88   : > { %v528_v59 = vsel %vm526_vm13, %v527_v16, %v525_v12  ;;  %v776_v25 = vadd.f32 0.045470025, %v774_v13  ;;  %v1228_v26 = vpop.eup %1227  ;;  %v698_v60 = vmul.f32 %v696_v36, %v2046_v31  ;;  %v2106_v63 = vsub.f32 %v1053_v35, %v1939_v22 }
  0x89   : > { %v530_v57 = vsel %vm506_vm8, %v528_v59, %v1929_v48  ;;  %v546_v33 = vadd.f32 0.16666752, %v544_v34  ;;  %v1230_v2 = vpop.eup %1229  ;;  %v603_v41 = vsel %vm602_vm14, %v2006_v7, %v601_v50  ;;  %v622_v16 = vmul.f32 %v620_v21, %v2024_v44 }
  0x8a   : > { %v548_v19 = vmul.f32 %v530_v57, %v1997_v4  ;;  %v761_v14 = vmul.f32 %v1228_v26, %v2017_v27  ;;  %v606_v28 = vsel %vm604_vm15, %v605_v61, %v603_v41  ;;  %v681_v13 = vmul.f32 %v1230_v2, %v2031_v17 }
  0x8b   : > { %v700_v11 = vadd.f32 0.074953005, %v698_v60  ;;  %v778_v22 = vmul.f32 %v776_v25, %v2038_v30  ;;  %v608_v12 = vsel %vm584_vm9, %v606_v28, %v1952_v3  ;;  %v624_v34 = vadd.f32 0.16666752, %v622_v16 }
  0x8c   : > { %v550_v35 = vmul.f32 %v548_v19, %v546_v33  ;;  %v763_v7 = vsel %vm762_vm0, %v2017_v27, %v761_v14  ;;  %v626_v61 = vmul.f32 %v608_v12, %v2024_v44  ;;  %v683_v33 = vsel %vm682_vm1, %v2031_v17, %v681_v13 }
  0x8d   : > { %v702_v45 = vmul.f32 %v700_v11, %v2046_v31  ;;  %v766_v20 = vsel %vm764_vm2, %v765_v52, %v763_v7  ;;  %v686_v59 = vsel %vm684_vm3, %v685_v47, %v683_v33  ;;  %v780_v44 = vadd.f32 0.074953005, %v778_v22 }
  0x8e   : > { %v552_v36 = vadd.f32 %v550_v35, %v530_v57  ;;  %v768_v50 = vsel %vm744_vm10, %v766_v20, %v1964_v38  ;;  %v628_v21 = vmul.f32 %v626_v61, %v624_v34  ;;  %v688_v57 = vsel %vm664_vm12, %v686_v59, %v1987_v10 }
  0x8f   : > { %v704_v27 = vadd.f32 0.16666752, %v702_v45  ;;  %v786_v17 = vmul.f32 %v768_v50, %v2038_v30  ;;  %v706_v52 = vmul.f32 %v688_v57, %v2046_v31  ;;  %v782_v26 = vmul.f32 %v780_v44, %v2038_v30 }
  0x90   : > { %v554_v47 = vmul.f32 2.0, %v552_v36  ;;  %v2157_v60 = vsub.f32 %v1055_v43, %v1955_v5  ;;  %v630_v51 = vadd.f32 %v628_v21, %v608_v12  ;;  %v2165_v2 = vsub.f32 %v1973_v32, %v1945_v24 }
  0x91   : > { %v2169_v19 = vsub.f32 %v2050_v55, %v1958_v29  ;;  %v708_v31 = vmul.f32 %v706_v52, %v704_v27  ;;  %v2646_v30 = vclamps-f32 %v1932_v53, 1.0  ;;  %v784_v43 = vadd.f32 0.16666752, %v782_v26 }
  0x92   : > { %v556_v41 = vsub.f32 1.5707964, %v554_v47  ;;  %v632_v6 = vmul.f32 2.0, %v630_v51  ;;  %v253_v24 = vmul.f32 %v1981_v8, %v1981_v8  ;;  %v257_v29 = vmul.f32 %v1992_v54, %v1992_v54 }
  0x93   : > { %vm2173_vm6 = vcmp.lt.f32.partialorder %v2646_v30, 0.0  ;;  %v261_v32 = vmul.f32 %v2003_v37, %v2003_v37  ;;  %v710_v55 = vadd.f32 %v708_v31, %v688_v57  ;;  %v788_v16 = vmul.f32 %v786_v17, %v784_v43 }
  0x94   : > { %v558_v53 = vsel %vm506_vm8, %v556_v41, %v552_v36  ;;  %v2649_v14 = vclamps-f32 %v1923_v39, 1.0  ;;  %v263_v13 = vmul.f32 %v2011_v0, %v2011_v0  ;;  %v634_v22 = vsub.f32 1.5707964, %v632_v6 }
  0x95   : > { %v562_v11 = vsub.f32 0.0, %v558_v53  ;;  %v255_v35 = vadd.f32 %v253_v24, %v251_v23  ;;  %v267_v12 = vmul.f32 %v2067_v1, %v2067_v1  ;;  %v712_v34 = vmul.f32 2.0, %v710_v55 }
  0x96   : > { %vm2189_vm7 = vcmp.lt.f32.partialorder %v2649_v14, 0.0  ;;  %v790_v48 = vadd.f32 %v788_v16, %v768_v50  ;;  %v265_v7 = vadd.f32 %v263_v13, %v261_v32  ;;  %v271_v61 = vmul.f32 %v2081_v15, %v2081_v15 }
  0x97   : > { %v564_v39 = vsel %vm2120_vm4, %v562_v11, %v558_v53  ;;  %v636_v33 = vsel %vm584_vm9, %v634_v22, %v630_v51  ;;  %v2203_v45 = vadd.f32 %v257_v29, %v255_v35  ;;  %v273_v20 = vmul.f32 %v2086_v62, %v2086_v62 }
  0x98   : > { %v640_v36 = vsub.f32 0.0, %v636_v33  ;;  %v714_v59 = vsub.f32 1.5707964, %v712_v34  ;;  %v792_v44 = vmul.f32 2.0, %v790_v48  ;;  %v2207_v21 = vadd.f32 %v267_v12, %v265_v7 }
  0x99   : > { %vm834_vm8 = vcmp.le.f32.partialorder %v1925_v40, 0.0  ;;  %v275_v50 = vadd.f32 %v273_v20, %v271_v61  ;;  %v277_v4 = vmul.f32 %v2089_v18, %v2089_v18  ;;  %v281_v3 = vmul.f32 %v2070_v42, %v2070_v42 }
  0x9a   : > { %v283_v57 = vmul.f32 %v2073_v46, %v2073_v46  ;;  %v642_v27 = vsel %vm2146_vm5, %v640_v36, %v636_v33  ;;  %v716_v17 = vsel %vm664_vm12, %v714_v59, %v710_v55  ;;  %v794_v47 = vsub.f32 1.5707964, %v792_v44 }
  0x9b   : > { %v287_v52 = vmul.f32 %v2076_v9, %v2076_v9  ;;  %v644_v26 = vadd.f32 %v642_v27, %v564_v39  ;;  %v720_v51 = vsub.f32 0.0, %v716_v17  ;;  %v279_v41 = vadd.f32 %v277_v4, %v275_v50 }
  0x9c   : > { %v285_v31 = vadd.f32 %v283_v57, %v281_v3  ;;  %v796_v30 = vsel %vm744_vm10, %v794_v47, %v790_v48  ;;  %v291_v43 = vmul.f32 %v2003_v37, %v1977_v49  ;;  %v293_v25 = vmul.f32 %v2011_v0, %v1981_v8 }
  0x9d   : > { %v297_v10 = vmul.f32 %v2067_v1, %v1992_v54  ;;  %v722_v23 = vsel %vm2173_vm6, %v720_v51, %v716_v17  ;;  %v800_v6 = vsub.f32 0.0, %v796_v30  ;;  %v301_v29 = vmul.f32 %v2081_v15, %v1977_v49 }
  0x9e   : > { %v289_v24 = vadd.f32 %v287_v52, %v285_v31  ;;  %v724_v32 = vadd.f32 %v722_v23, %v644_v26  ;;  %v295_v38 = vadd.f32 %v293_v25, %v291_v43  ;;  %v303_v53 = vmul.f32 %v2086_v62, %v1981_v8 }
  0x9f   : > { %v307_v55 = vmul.f32 %v2089_v18, %v1992_v54  ;;  %v802_v16 = vsel %vm2189_vm7, %v800_v6, %v796_v30  ;;  %v311_v5 = vmul.f32 %v2070_v42, %v1977_v49  ;;  %v313_v14 = vmul.f32 %v2073_v46, %v1981_v8 }
  0xa0   : > { %v317_v13 = vmul.f32 %v2076_v9, %v1992_v54  ;;  %v804_v11 = vadd.f32 %v802_v16, %v724_v32  ;;  %v299_v22 = vadd.f32 %v297_v10, %v295_v38  ;;  %v305_v35 = vadd.f32 %v303_v53, %v301_v29 }
  0xa1   : > { %v321_v12 = vmul.f32 %v2081_v15, %v2003_v37  ;;  %v315_v34 = vadd.f32 %v313_v14, %v311_v5  ;;  %v323_v28 = vmul.f32 %v2086_v62, %v2011_v0  ;;  %v327_v48 = vmul.f32 %v2089_v18, %v2067_v1 }
  0xa2   : > { %v331_v7 = vmul.f32 %v2070_v42, %v2003_v37  ;;  %v836_v61 = vsub.f32 0.0, %v804_v11  ;;  %v309_v39 = vadd.f32 %v307_v55, %v305_v35  ;;  %v333_v33 = vmul.f32 %v2073_v46, %v2011_v0 }
  0xa3   : > { %v337_v20 = vmul.f32 %v2076_v9, %v2067_v1  ;;  %v319_v36 = vadd.f32 %v317_v13, %v315_v34  ;;  %v325_v59 = vadd.f32 %v323_v28, %v321_v12  ;;  %v341_v44 = vmul.f32 %v2081_v15, %v2070_v42 }
  0xa4   : > { %v343_v50 = vmul.f32 %v2086_v62, %v2073_v46  ;;  %v838_v4 = vsel %vm834_vm8, %v836_v61, %v804_v11  ;;  %v335_v3 = vadd.f32 %v333_v33, %v331_v7  ;;  %v347_v57 = vmul.f32 %v2089_v18, %v2076_v9 }
  0xa5   : > { %v351_v27 = vmul.f32 %v2207_v21, %v2203_v45  ;;  %935 = vmatprep.mubr.f32.mxu0 %v838_v4  ;;  %v329_v17 = vadd.f32 %v327_v48, %v325_v59  ;;  %v353_v52 = vmul.f32 %v299_v22, %v299_v22  ;;  %v357_v26 = vmul.f32 %v279_v41, %v2207_v21 }
  0xa6   : > { %v345_v47 = vadd.f32 %v343_v50, %v341_v44  ;;  %v339_v51 = vadd.f32 %v337_v20, %v335_v3  ;;  %v363_v31 = vmul.f32 %v289_v24, %v279_v41  ;;  %v369_v30 = vmul.f32 %v289_v24, %v2203_v45 }
  0xa7   : > { %v371_v43 = vmul.f32 %v319_v36, %v319_v36  ;;  %v2270_v25 = vsub.f32 %v351_v27, %v353_v52  ;;  %v359_v10 = vmul.f32 %v329_v17, %v329_v17  ;;  %v2272_v23 = vmul.f32 %v329_v17, %v299_v22 }
  0xa8   : > { %v349_v40 = vadd.f32 %v347_v57, %v345_v47  ;;  %v2277_v29 = vmul.f32 %v309_v39, %v2207_v21  ;;  %v2279_v32 = vmul.f32 %v339_v51, %v279_v41  ;;  %v2281_v38 = vmul.f32 %v309_v39, %v289_v24 }
  0xa9   : > { %v2274_v6 = vsub.f32 %v369_v30, %v371_v43  ;;  %v2283_v53 = vsub.f32 %v357_v26, %v359_v10  ;;  %v2291_v13 = vmul.f32 %v319_v36, %v299_v22  ;;  %v2294_v11 = vmul.f32 %v339_v51, %v2203_v45 }
  0xaa   : > { %v365_v55 = vmul.f32 %v349_v40, %v349_v40  ;;  %v2285_v16 = vmul.f32 %v349_v40, %v329_v17  ;;  %v2287_v5 = vmul.f32 %v349_v40, %v319_v36  ;;  %v379_v14 = vsub.f32 %v2272_v23, %v2277_v29 }
  0xab   : > { %vm399_vm9 = vcmp.gt.f32.partialorder %v2270_v25, 0.0  ;;  %vm401_vm10 = vcmp.gt.f32.partialorder %v2283_v53, 0.0  ;;  %v397_v35 = vsub.f32 %v2291_v13, %v2294_v11  ;;  %vm405_vm11 = vcmp.gt.f32.partialorder %v2274_v6, 0.0 }
  0xac   : > { %v2297_v21 = vsub.f32 %v363_v31, %v365_v55  ;;  %v385_v41 = vsub.f32 %v2285_v16, %v2279_v32  ;;  %v391_v24 = vsub.f32 %v2287_v5, %v2281_v38  ;;  %v407_v45 = vsel %vm399_vm9, %v2270_v25, 1.0  ;;  %vm2362_vm13 = vmand %vm399_vm9, %vm401_vm10 }
  0xad   : > { %v411_v22 = vsel %vm401_vm10, %v2283_v53, 1.0  ;;  %1231 = vrsqrt.f32 %v407_v45  ;;  %v419_v12 = vsel %vm405_vm11, %v2274_v6, 1.0  ;;  %v423_v34 = vsub.f32 %v2011_v0, %v2067_v1  ;;  %vm725_vm15 = vmand %vm405_vm11, %vm399_vm9 }
  0xae   : > { %vm403_vm12 = vcmp.gt.f32.partialorder %v2297_v21, 0.0  ;;  %1233 = vrsqrt.f32 %v411_v22  ;;  %v425_v48 = vsub.f32 %v2067_v1, %v2003_v37  ;;  %v427_v7 = vsub.f32 %v2003_v37, %v2011_v0 }
  0xaf   : > { %v415_v28 = vsel %vm403_vm12, %v2297_v21, 1.0  ;;  %v429_v61 = vmul.f32 %v423_v34, %v1977_v49  ;;  %v439_v39 = vsub.f32 %v2086_v62, %v2089_v18  ;;  %v441_v33 = vsub.f32 %v2089_v18, %v2081_v15  ;;  %vm2382_vm14 = vmand %vm401_vm10, %vm403_vm12 }
  0xb0   : > { %1235 = vrsqrt.f32 %v415_v28  ;;  %v431_v20 = vmul.f32 %v425_v48, %v1981_v8  ;;  %v435_v36 = vmul.f32 %v427_v7, %v1992_v54  ;;  %v443_v59 = vsub.f32 %v2081_v15, %v2086_v62  ;;  %vm645_vm0 = vmand %vm403_vm12, %vm405_vm11 }
  0xb1   : > { %1237 = vrsqrt.f32 %v419_v12  ;;  %v445_v44 = vmul.f32 %v439_v39, %v2003_v37  ;;  %v447_v50 = vmul.f32 %v441_v33, %v2011_v0  ;;  %v455_v4 = vsub.f32 %v2073_v46, %v2076_v9 }
  0xb2   : > { %v457_v3 = vsub.f32 %v2076_v9, %v2070_v42  ;;  %v433_v57 = vadd.f32 %v431_v20, %v429_v61  ;;  %v451_v27 = vmul.f32 %v443_v59, %v2067_v1  ;;  %v459_v17 = vsub.f32 %v2070_v42, %v2073_v46 }
  0xb3   : > { %v471_v47 = vsub.f32 %v1981_v8, %v1992_v54  ;;  %v449_v52 = vadd.f32 %v447_v50, %v445_v44  ;;  %v461_v37 = vmul.f32 %v455_v4, %v2081_v15  ;;  %v473_v26 = vsub.f32 %v1992_v54, %v1977_v49 }
  0xb4   : > { %v463_v0 = vmul.f32 %v457_v3, %v2086_v62  ;;  %v437_v51 = vadd.f32 %v435_v36, %v433_v57  ;;  %v467_v31 = vmul.f32 %v459_v17, %v2089_v18  ;;  %v475_v1 = vsub.f32 %v1977_v49, %v1981_v8 }
  0xb5   : > { %v477_v30 = vmul.f32 %v471_v47, %v2070_v42  ;;  %v453_v43 = vadd.f32 %v451_v27, %v449_v52  ;;  %v479_v10 = vmul.f32 %v473_v26, %v2073_v46  ;;  %v805_v15 = vmul.f32 %v2165_v2, %v2157_v60 }
  0xb6   : > { %v465_v40 = vadd.f32 %v463_v0, %v461_v37  ;;  %v483_v62 = vmul.f32 %v475_v1, %v2076_v9  ;;  %v727_v42 = vsel %vm399_vm9, %v437_v51, 3.0  ;;  %v807_v55 = vmul.f32 %v2169_v19, %v2106_v63 }
  0xb7   : > { %v813_v46 = vmul.f32 %v2169_v19, %v2096_v58  ;;  %v1232_v45 = vpop.eup %1231  ;;  %v481_v9 = vadd.f32 %v479_v10, %v477_v30  ;;  %v489_v12 = vsel %vm401_vm10, %v453_v43, 3.0  ;;  %v815_v34 = vmul.f32 %v2161_v56, %v2157_v60 }
  0xb8   : > { %v469_v22 = vadd.f32 %v467_v31, %v465_v40  ;;  %v1234_v28 = vpop.eup %1233  ;;  %v491_v48 = vsel %vm399_vm9, %v437_v51, %v489_v12  ;;  %v809_v19 = vsub.f32 %v805_v15, %v807_v55  ;;  %v823_v61 = vmul.f32 %v2161_v56, %v2106_v63 }
  0xb9   : > { %v825_v39 = vmul.f32 %v2165_v2, %v2096_v58  ;;  %v485_v33 = vadd.f32 %v483_v62, %v481_v9  ;;  %v493_v20 = vsel %vm2362_vm13, %v379_v14, %v491_v48  ;;  %v817_v63 = vsub.f32 %v813_v46, %v815_v34 }
  0xba   : > { %v1236_v60 = vpop.eup %1235  ;;  %v567_v36 = vsel %vm403_vm12, %v469_v22, 3.0  ;;  %v495_v59 = vmul.f32 %v1232_v45, %v493_v20  ;;  %v811_v2 = vmul.f32 %v809_v19, %v1977_v49 }
  0xbb   : > { %v1238_v56 = vpop.eup %1237  ;;  %v569_v58 = vsel %vm401_vm10, %v453_v43, %v567_v36  ;;  %v827_v23 = vsub.f32 %v823_v61, %v825_v39  ;;  %v647_v29 = vsel %vm405_vm11, %v485_v33, 3.0  ;;  %v729_v53 = vsel %vm405_vm11, %v485_v33, %v727_v42 }
  0xbc   : > { %v571_v25 = vsel %vm2382_vm14, %v385_v41, %v569_v58  ;;  %v819_v14 = vmul.f32 %v817_v63, %v1981_v8  ;;  %v2418_v44 = vmul.f32 %v1234_v28, %v495_v59  ;;  %v649_v49 = vsel %vm403_vm12, %v469_v22, %v647_v29 }
  0xbd   : > { %v573_v50 = vmul.f32 %v1234_v28, %v571_v25  ;;  %v731_v32 = vsel %vm725_vm15, %v397_v35, %v729_v53  ;;  %v651_v16 = vsel %vm645_vm0, %v391_v24, %v649_v49  ;;  %v829_v6 = vmul.f32 %v827_v23, %v1992_v54 }
  0xbe   : > { %v733_v41 = vmul.f32 %v1238_v56, %v731_v32  ;;  %v821_v4 = vadd.f32 %v819_v14, %v811_v2  ;;  %v1069_v8 = vclamps-f32 %v2418_v44, 1.0  ;;  %v653_v57 = vmul.f32 %v1236_v60, %v651_v16 }
  0xbf   : > { %v2430_v3 = vmul.f32 %v1236_v60, %v573_v50 }
  0xc0   : > { %v2432_v27 = vmul.f32 %v1232_v45, %v733_v41  ;;  %v2434_v21 = vadd.f32 %v829_v6, %v821_v4  ;;  %v2438_v13 = vand.u32 2147483647, %v1069_v8  ;;  %v2441_v5 = vmul.f32 %v1238_v56, %v653_v57 }
  0xc1   : > { %v1071_v38 = vclamps-f32 %v2430_v3, 1.0  ;;  %vm559_vm13 = vcmp.lt.f32.partialorder %v1069_v8, 0.0 }
  0xc2   : > { %v1075_v11 = vclamps-f32 %v2432_v27, 1.0  ;;  %v507_v54 = vsub.f32 1.0, %v2438_v13  ;;  %v511_v24 = vmul.f32 %v2438_v13, %v2438_v13  ;;  %vm505_vm1 = vcmp.gt.f32.partialorder %v2438_v13, 0.5 }
  0xc3   : > { %v2449_v35 = vand.u32 2147483647, %v1071_v38  ;;  %v1073_v17 = vclamps-f32 %v2441_v5, 1.0  ;;  %vm637_vm14 = vcmp.lt.f32.partialorder %v1071_v38, 0.0 }
  0xc4   : > { %v2455_v47 = vand.u32 2147483647, %v1075_v11  ;;  %v509_v52 = vmul.f32 0.5, %v507_v54  ;;  %vm797_vm0 = vcmp.lt.f32.partialorder %v1075_v11, 0.0 }
  0xc5   : > { %v585_v37 = vsub.f32 1.0, %v2449_v35  ;;  %v589_v0 = vmul.f32 %v2449_v35, %v2449_v35  ;;  %v2462_v26 = vand.u32 2147483647, %v1073_v17  ;;  %vm583_vm2 = vcmp.gt.f32.partialorder %v2449_v35, 0.5 }
  0xc6   : > { %v745_v51 = vsub.f32 1.0, %v2455_v47  ;;  %v513_v31 = vsel %vm505_vm1, %v509_v52, %v511_v24  ;;  %1239 = vrsqrt.f32 %v509_v52  ;;  %vm743_vm3 = vcmp.gt.f32.partialorder %v2455_v47, 0.5 }
  0xc7   : > { %v531_v1 = vmul.f32 0.0421632, %v513_v31  ;;  %v2468_v30 = vmul.f32 0.5, %v585_v37  ;;  %v665_v43 = vsub.f32 1.0, %v2462_v26  ;;  %v669_v40 = vmul.f32 %v2462_v26, %v2462_v26 }
  0xc8   : > { %v2474_v10 = vmul.f32 0.5, %v745_v51  ;;  %v749_v15 = vmul.f32 %v2455_v47, %v2455_v47  ;;  %vm663_vm4 = vcmp.gt.f32.partialorder %v2462_v26, 0.5  ;;  %vm517_vm5 = vcmp.eq.f32.partialorder %v509_v52, inf }
  0xc9   : > { %v533_v62 = vadd.f32 0.024181312, %v531_v1  ;;  %v2481_v18 = vsel %vm583_vm2, %v2468_v30, %v589_v0  ;;  %1241 = vrsqrt.f32 %v2468_v30  ;;  %v2486_v55 = vmul.f32 0.5, %v665_v43 }
  0xca   : > { %v609_v42 = vmul.f32 0.0421632, %v2481_v18  ;;  %v2491_v45 = vsel %vm743_vm3, %v2474_v10, %v749_v15  ;;  %1243 = vrsqrt.f32 %v2474_v10  ;;  %vm519_vm6 = vcmp.eq.f32.partialorder %v509_v52, 0.0 }
  0xcb   : > { %v535_v46 = vmul.f32 %v533_v62, %v513_v31  ;;  %v2497_v9 = vsel %vm663_vm4, %v2486_v55, %v669_v40  ;;  %1245 = vrsqrt.f32 %v2486_v55  ;;  %v520_v28 = vand.u32 2147483648, %v509_v52 }
  0xcc   : > { %v611_v22 = vadd.f32 0.024181312, %v609_v42  ;;  %v689_v34 = vmul.f32 0.0421632, %v2497_v9  ;;  %v769_v7 = vmul.f32 0.0421632, %v2491_v45 }
  0xcd   : > { %v537_v12 = vadd.f32 0.045470025, %v535_v46  ;;  %vm595_vm7 = vcmp.eq.f32.partialorder %v2468_v30, inf  ;;  %vm597_vm8 = vcmp.eq.f32.partialorder %v2468_v30, 0.0  ;;  %v598_v60 = vand.u32 2147483648, %v2468_v30 }
  0xce   : > { %v613_v48 = vmul.f32 %v611_v22, %v2481_v18  ;;  %v691_v61 = vadd.f32 0.024181312, %v689_v34  ;;  %vm755_vm9 = vcmp.eq.f32.partialorder %v2474_v10, inf  ;;  %v771_v20 = vadd.f32 0.024181312, %v769_v7 }
  0xcf   : > { %v539_v19 = vmul.f32 %v537_v12, %v513_v31  ;;  %vm675_vm10 = vcmp.eq.f32.partialorder %v2486_v55, inf  ;;  %vm677_vm11 = vcmp.eq.f32.partialorder %v2486_v55, 0.0  ;;  %v678_v58 = vand.u32 2147483648, %v2486_v55 }
  0xd0   : > { %v1240_v39 = vpop.eup %1239  ;;  %v615_v33 = vadd.f32 0.045470025, %v613_v48  ;;  %v693_v56 = vmul.f32 %v691_v61, %v2497_v9  ;;  %v773_v2 = vmul.f32 %v771_v20, %v2491_v45  ;;  %vm757_vm12 = vcmp.eq.f32.partialorder %v2474_v10, 0.0 }
  0xd1   : > { %v516_v36 = vmul.f32 %v1240_v39, %v509_v52  ;;  %v541_v63 = vadd.f32 0.074953005, %v539_v19  ;;  %v758_v57 = vand.u32 2147483648, %v2474_v10  ;;  %vm717_vm15 = vcmp.lt.f32.partialorder %v1073_v17, 0.0 }
  0xd2   : > { %v617_v59 = vmul.f32 %v615_v33, %v2481_v18  ;;  %v695_v53 = vadd.f32 0.045470025, %v693_v56  ;;  %v775_v32 = vadd.f32 0.045470025, %v773_v2 }
  0xd3   : > { %v1242_v23 = vpop.eup %1241  ;;  %v518_v25 = vsel %vm517_vm5, %v509_v52, %v516_v36  ;;  %v543_v29 = vmul.f32 %v541_v63, %v513_v31 }
  0xd4   : > { %v521_v14 = vsel %vm519_vm6, %v520_v28, %v518_v25  ;;  %v594_v50 = vmul.f32 %v1242_v23, %v2468_v30  ;;  %v619_v49 = vadd.f32 0.074953005, %v617_v59  ;;  %v1244_v16 = vpop.eup %1243  ;;  %v697_v6 = vmul.f32 %v695_v53, %v2497_v9 }
  0xd5   : > { %v529_v41 = vsel %vm505_vm1, %v521_v14, %v2438_v13  ;;  %v545_v4 = vadd.f32 0.16666752, %v543_v29  ;;  %v1246_v54 = vpop.eup %1245  ;;  %v754_v0 = vmul.f32 %v1244_v16, %v2474_v10  ;;  %v777_v40 = vmul.f32 %v775_v32, %v2491_v45 }
  0xd6   : > { %v547_v24 = vmul.f32 %v529_v41, %v513_v31  ;;  %v596_v52 = vsel %vm595_vm7, %v2468_v30, %v594_v50  ;;  %v621_v37 = vmul.f32 %v619_v49, %v2481_v18  ;;  %v674_v1 = vmul.f32 %v1246_v54, %v2486_v55 }
  0xd7   : > { %v599_v51 = vsel %vm597_vm8, %v598_v60, %v596_v52  ;;  %v699_v43 = vadd.f32 0.074953005, %v697_v6  ;;  %v756_v42 = vsel %vm755_vm9, %v2474_v10, %v754_v0  ;;  %v779_v7 = vadd.f32 0.074953005, %v777_v40 }
  0xd8   : > { %v549_v15 = vmul.f32 %v547_v24, %v545_v4  ;;  %v607_v31 = vsel %vm583_vm2, %v599_v51, %v2449_v35  ;;  %v623_v62 = vadd.f32 0.16666752, %v621_v37  ;;  %v676_v30 = vsel %vm675_vm10, %v2486_v55, %v674_v1 }
  0xd9   : > { %v625_v46 = vmul.f32 %v607_v31, %v2481_v18  ;;  %v701_v22 = vmul.f32 %v699_v43, %v2497_v9  ;;  %v759_v12 = vsel %vm757_vm12, %v758_v57, %v756_v42  ;;  %v679_v28 = vsel %vm677_vm11, %v678_v58, %v676_v30 }
  0xda   : > { %v551_v34 = vadd.f32 %v549_v15, %v529_v41  ;;  %v767_v48 = vsel %vm743_vm3, %v759_v12, %v2455_v47  ;;  %v687_v18 = vsel %vm663_vm4, %v679_v28, %v2462_v26  ;;  %v781_v10 = vmul.f32 %v779_v7, %v2491_v45 }
  0xdb   : > { %v627_v19 = vmul.f32 %v625_v46, %v623_v62  ;;  %v703_v61 = vadd.f32 0.16666752, %v701_v22  ;;  %v705_v60 = vmul.f32 %v687_v18, %v2497_v9  ;;  %v785_v33 = vmul.f32 %v767_v48, %v2491_v45 }
  0xdc   : > { %v553_v39 = vmul.f32 2.0, %v551_v34  ;;  %v783_v63 = vadd.f32 0.16666752, %v781_v10 }
  0xdd   : > { %v629_v55 = vadd.f32 %v627_v19, %v607_v31  ;;  %v707_v36 = vmul.f32 %v705_v60, %v703_v61 }
  0xde   : > { %v555_v20 = vsub.f32 1.5707964, %v553_v39  ;;  %v787_v2 = vmul.f32 %v785_v33, %v783_v63 }
  0xdf   : > { %v631_v56 = vmul.f32 2.0, %v629_v55  ;;  %v709_v58 = vadd.f32 %v707_v36, %v687_v18 }
  0xe0   : > { %v557_v59 = vsel %vm505_vm1, %v555_v20, %v551_v34  ;;  %v789_v29 = vadd.f32 %v787_v2, %v767_v48  ;;  %vm833_vm1 = vcmp.le.f32.partialorder %v2434_v21, 0.0 }
  0xe1   : > { %v561_v23 = vsub.f32 0.0, %v557_v59  ;;  %v633_v25 = vsub.f32 1.5707964, %v631_v56  ;;  %v711_v9 = vmul.f32 2.0, %v709_v58 }
  0xe2   : > { %v791_v13 = vmul.f32 2.0, %v789_v29 }
  0xe3   : > { %v635_v45 = vsel %vm583_vm2, %v633_v25, %v629_v55  ;;  %v563_v53 = vsel %vm559_vm13, %v561_v23, %v557_v59  ;;  %v713_v50 = vsub.f32 1.5707964, %v711_v9  ;;  %vm941_vm2 = vcmask 203776  }
  0xe4   : > { %v639_v14 = vsub.f32 0.0, %v635_v45  ;;  %v793_v44 = vsub.f32 1.5707964, %v791_v13 }
  0xe5   : > { %v715_v32 = vsel %vm663_vm4, %v713_v50, %v709_v58 }
  0xe6   : > { %v641_v49 = vsel %vm637_vm14, %v639_v14, %v635_v45  ;;  %v719_v35 = vsub.f32 0.0, %v715_v32  ;;  %v795_v3 = vsel %vm743_vm3, %v793_v44, %v789_v29 }
  0xe7   : > { %v643_v8 = vadd.f32 %v641_v49, %v563_v53  ;;  %v799_v16 = vsub.f32 0.0, %v795_v3 }
  0xe8   : > { %v721_v38 = vsel %vm717_vm15, %v719_v35, %v715_v32 }
  0xe9   : > { %v723_v41 = vadd.f32 %v721_v38, %v643_v8  ;;  %v801_v4 = vsel %vm797_vm0, %v799_v16, %v795_v3 }
  0xeb   : > { %v803_v26 = vadd.f32 %v801_v4, %v723_v41 }
  0xed   : > { %v835_v5 = vsub.f32 0.0, %v803_v26 }
  0xef   : > { %v837_v17 = vsel %vm833_vm1, %v835_v5, %v803_v26 }
  0xf0   : > { %936 = vmatmul.mubr.f32.vlgmr.msra.gmra.mrb[0].mxu0 %v837_v17 }
 0x1c3   : > { %v1113_v47 = vpop.f32.mrb[0].mxu0 }
 0x1c4   : > { %v1114_v6 = vpop.f32.mrb[1].mxu0 }
 0x1c5   : > { %v1115_v27 = vadd.f32 %v1114_v6, %v1113_v47 }
 0x1c7   : > { %942 = vst.msk [vmem:[%s179_s3] sm:$0xff] %vm941_vm2, %v1115_v27 }
 0x1c8   : > { %1290 = shalt.err (!%p1287_p4)
}
 0x1c9   : > { %s1291_s4 = scalar_lea.hbm %s2577_s18, 128  ;;  %s1295_s29 = scalar_lea.hbm %s2628_s2, 256 }
 0x1ca   : > { %p1292_p6 = scmp.ne.s32.totalorder %s2577_s18, %s1291_s4  ;;  %p1296_p12 = scmp.lt.u32.totalorder %s2577_s18, %s2628_s2 }
 0x1cb   : > { %p1297_p1 = scmp.lt.u32.totalorder %s1295_s29, %s1291_s4  ;;  %p1299_p8 = scmp.lt.u32.totalorder %s1291_s4, %s2577_s18 }
 0x1cc   : > { %p1293_p7 = pnand %p1292_p6, %p2656_p9 }
 0x1cd   : > { %p1298_p3 = por %p1297_p1, %p1296_p12 }
 0x1ce   : > { %p1294_p10 = pneg %p1293_p7 }
 0x1cf   : > { %p1300_p11 = por %p1299_p8, %p1298_p3 }
 0x1d1   : > { %p1301_p0 = pnand %p1300_p11, %p1294_p10 }
 0x1d3   : > { %1304 = shalt.err (!%p1301_p0)
}
 0x1d4   : > { %1153 = dma.vmem_to_hbm [thread:$0]  (%p2656_p9), %s2579_s5, 128, %s2577_s18, %s944_s19  }
 0x1d5 PF: > { %s970_s8 = sand.u32 1, %s1339_s9   ;;  %p2657_p5 = scmp.ne.s32.totalorder %s2635_s24, 0 }
 0x1d6   : > { %p2658_p13 = scmp.ge.s32.totalorder %s1359_s14, 2  ;;  %s971_s15 = scalar_lea.sflag [#allocation4], %s970_s8 }
 0x1d8   : > { %p1160_p2 = pnand %p2658_p13, %p2657_p5 }
 0x1da   : > { %1334 = dma.done.wait (!%p1160_p2), %s971_s15, 128  }
 0x1db   : > { %1336 = vsyncadd (!%p1160_p2), %s971_s15, 4294967168  ;;  %s18_s14 = sadd.s32 1, %s1359_s14   ;;  %s2659_s9 = smov %s1343_s10 }
 0x1dc   : > { %p15_p4 = scmp.ge.s32.totalorder %s18_s14, 4   ;;  %s2660_s10 = smov %s1347_s11 }
 0x1dd   : > { %s2661_s11 = smov %s1436_s23  ;;  %s2662_s12 = smov %s1355_s13 }
 0x1de   : > { %s2663_s13 = smov %s2665_s17  ;;  %17 = sbr.rel (!%p15_p4) target bundleno = 6 (0x6), region = 84 }
 0x1e5   :  { %976 = vsyncpa [#allocation3], 1 }
 0x1e6   :  { %978 = vsyncpa [#allocation3 + $0x1], 1 }
 0x1e7   :  { %979 = vsyncpa [#allocation4], 1 }
 0x1e8   :  { %981 = vsyncpa [#allocation4 + $0x1], 1 }

</bundles_post_ra>
